<compile_context>
chip_gen: v5e
topology: v5e:2x2
jax: 0.10.0
libtpu: 0.0.40
codegen_flags: <defaults>
</compile_context>

<pallas_src>
import math
import functools

import jax
import jax.numpy as jnp
from jax.experimental import pallas as pl
from jax.experimental.pallas import tpu as pltpu


def _rgcn_kernel(h_full_ref, h_tile_ref, a_ref, wrel_ref, w0_ref, wgu_ref,
                 wgh_ref, o_ref, acc_ref):
    """One (row-tile, relation) grid step.

    h_full_ref: (N, D_in)       resident; RHS of the A @ H contraction
    h_tile_ref: (TM, D_in)      current row tile of (padded) H
    a_ref:      (TM, N)         row tile of A_r (bf16, relation axis squeezed)
    wrel_ref:   (D_in, D_out)   W_r for the current relation
    w0_ref:     (D_in, D_out)
    wgu_ref:    (D_in, D_out)   gate-weight rows multiplying `update`
    wgh_ref:    (D_in, D_out)   gate-weight rows multiplying H
    o_ref:      (TM, D_out)     output row tile (same block across relations)
    acc_ref:    (TM, D_out) f32 message accumulator scratch
    """
    r = pl.program_id(1)

    @pl.when(r == 0)
    def _init():
        acc_ref[...] = jnp.zeros_like(acc_ref)

    # Unnormalized message for relation r on this row tile: (A_r @ H) @ W_r.
    ah = jnp.dot(a_ref[...].astype(jnp.float32),
                 h_full_ref[...].astype(jnp.float32),
                 preferred_element_type=jnp.float32)
    acc_ref[...] += jnp.dot(ah, wrel_ref[...].astype(jnp.float32),
                            preferred_element_type=jnp.float32)

    @pl.when(r == pl.num_programs(1) - 1)
    def _finalize():
        n = h_full_ref.shape[0]                          # original (unpadded) N
        h = h_tile_ref[...].astype(jnp.float32)
        msg = acc_ref[...] * jnp.float32(1.0 / (n - 1))  # fold 1/(N-1) once
        update = msg + jnp.dot(h, w0_ref[...].astype(jnp.float32),
                               preferred_element_type=jnp.float32)
        # gate = sigmoid(cat(update, H) @ Wg) = sigmoid(update@Wg_u + H@Wg_h)
        gate_logits = (
            jnp.dot(update, wgu_ref[...].astype(jnp.float32),
                    preferred_element_type=jnp.float32)
            + jnp.dot(h, wgh_ref[...].astype(jnp.float32),
                      preferred_element_type=jnp.float32))
        gate = jax.nn.sigmoid(gate_logits)
        hidden = jnp.tanh(update) * gate + h * (1.0 - gate)
        o_ref[...] = hidden.astype(o_ref.dtype)


def _round_up(x, m):
    return (x + m - 1) // m * m


def rgcn_layer(H, A_stack, W0, W_rel, Wg, *, block_rows=128,
               adj_dtype=jnp.bfloat16):
    """Gated RGCN layer forward.

    H:       (N, D_in)
    A_stack: (R, N, N)     stacked adjacency matrices (one per relation)
    W0:      (D_in, D_out)
    W_rel:   (R, D_in, D_out)
    Wg:      (2*D_in, D_out)   rows [0:D_in] -> update, rows [D_in:] -> H
    returns  (N, D_out)
    """
    N, d_in = H.shape
    R = A_stack.shape[0]
    d_out = W0.shape[1]
    if d_in != d_out:
        raise ValueError("H * (1 - gate) requires hidden_in == hidden_out")
    assert A_stack.shape == (R, N, N)
    assert W_rel.shape == (R, d_in, d_out)
    assert Wg.shape == (2 * d_in, d_out)

    # Row-tile size: multiple of 8 sublanes; keep the double-buffered (TM, N)
    # A tiles well inside VMEM even on v7x (64 MiB physical).
    tm = min(block_rows, _round_up(N, 8))
    a_bytes = jnp.dtype(adj_dtype).itemsize
    while tm > 8 and 2 * tm * N * a_bytes > 24 * 1024 * 1024:
        tm //= 2
    n_pad = _round_up(N, tm)
    n_tiles = n_pad // tm

    # bf16 adjacency: exact for 0/1 entries, halves the dominant HBM stream.
    A = A_stack.astype(adj_dtype)
    if n_pad != N:
        A = jnp.pad(A, ((0, 0), (0, n_pad - N), (0, 0)))
        H_tiled = jnp.pad(H, ((0, n_pad - N), (0, 0)))
    else:
        H_tiled = H

    # Pre-split the gate weight so the kernel never slices a loaded value.
    Wg_u = Wg[:d_in]
    Wg_h = Wg[d_in:]

    f32 = 4
    vmem_est = (
        2 * tm * N * a_bytes        # A tile (double-buffered)
        + N * d_in * f32            # resident H
        + 2 * tm * d_in * f32       # H row tile (double-buffered)
        + 2 * d_in * d_out * f32    # W_rel block (double-buffered)
        + 3 * d_in * d_out * f32    # W0, Wg_u, Wg_h
        + 2 * tm * d_out * f32      # output tile (double-buffered)
        + tm * d_out * f32          # accumulator scratch
    )
    vmem_limit = int(min(max(2 * vmem_est, 16 * 1024 * 1024),
                         64 * 1024 * 1024))

    grid_spec = pltpu.PrefetchScalarGridSpec(
        num_scalar_prefetch=0,
        grid=(n_tiles, R),
        in_specs=[
            pl.BlockSpec((N, d_in), lambda i, r: (0, 0)),               # H full
            pl.BlockSpec((tm, d_in), lambda i, r: (i, 0)),              # H tile
            pl.BlockSpec((None, tm, N), lambda i, r: (r, i, 0)),        # A_r tile
            pl.BlockSpec((None, d_in, d_out), lambda i, r: (r, 0, 0)),  # W_r
            pl.BlockSpec((d_in, d_out), lambda i, r: (0, 0)),           # W0
            pl.BlockSpec((d_in, d_out), lambda i, r: (0, 0)),           # Wg_u
            pl.BlockSpec((d_in, d_out), lambda i, r: (0, 0)),           # Wg_h
        ],
        out_specs=pl.BlockSpec((tm, d_out), lambda i, r: (i, 0)),
        scratch_shapes=[pltpu.VMEM((tm, d_out), jnp.float32)],
    )

    out = pl.pallas_call(
        _rgcn_kernel,
        out_shape=jax.ShapeDtypeStruct((n_pad, d_out), H.dtype),
        grid_spec=grid_spec,
        compiler_params=pltpu.CompilerParams(
            dimension_semantics=("parallel", "arbitrary"),
            vmem_limit_bytes=vmem_limit),
    )(H, H_tiled, A, W_rel, W0, Wg_u, Wg_h)

    return out[:N]


def _kaiming_uniform(key, shape, dtype=jnp.float32):
    # Mimics torch.nn.init.kaiming_uniform_ defaults on a 2D tensor:
    # fan_in = shape[1], gain = sqrt(2), bound = gain * sqrt(3 / fan_in).
    fan_in = shape[1]
    bound = math.sqrt(2.0) * math.sqrt(3.0 / fan_in)
    return jax.random.uniform(key, shape, dtype, minval=-bound, maxval=bound)


def _reference(H, A_stack, W0, W_rel, Wg):
    # Pure-JAX reference for a sanity check (same math as the PyTorch module).
    N = H.shape[0]
    adj_norm = A_stack / (N - 1)
    msg = jnp.einsum("rnm,md->rnd", adj_norm, H)
    msg = jnp.einsum("rnd,rde->ne", msg, W_rel)
    update = H @ W0 + msg
    gate = jax.nn.sigmoid(jnp.concatenate([update, H], axis=1) @ Wg)
    return jnp.tanh(update) * gate + H * (1.0 - gate)


if __name__ == "__main__":
    # Small deterministic example: N nodes, hidden_in == hidden_out (required
    # by H * (1 - gate)), 3 relations.  D is a multiple of 128 so the output
    # stores are lane-dense.
    N, D_IN, D_OUT, R = 256, 128, 128, 3

    key = jax.random.PRNGKey(0)
    k_h, k_a, k_w0, k_wr, k_wg = jax.random.split(key, 5)

    H = jax.random.normal(k_h, (N, D_IN), jnp.float32)
    # Binary adjacency matrices (one per relation) — exactly representable
    # in bf16, so the bf16 A path is numerically exact.
    A_stack = (jax.random.uniform(k_a, (R, N, N)) < 0.3).astype(jnp.float32)

    W0 = _kaiming_uniform(k_w0, (D_IN, D_OUT))
    W_rel = jnp.stack(
        [_kaiming_uniform(k, (D_IN, D_OUT)) for k in jax.random.split(k_wr, R)],
        axis=0)
    Wg = _kaiming_uniform(k_wg, (2 * D_IN, D_OUT))

    out = jax.jit(rgcn_layer)(H, A_stack, W0, W_rel, Wg)
    out = jax.block_until_ready(out)

    with jax.default_matmul_precision("float32"):
        ref = _reference(H, A_stack, W0, W_rel, Wg)

    assert out.shape == (N, D_OUT)
    # Tolerance accounts for MXU f32 (multi-pass bf16) matmul rounding and the
    # reassociated 1/(N-1) scaling; real bugs produce O(1) mismatches.
    assert jnp.allclose(out, ref, atol=2e-2, rtol=2e-2), "mismatch vs JAX reference"

    print("KERNEL_OK")
</pallas_src>

<mosaic_0001>
module attributes {stable_mosaic.version = 11 : i64} {
  func.func @_rgcn_kernel(%arg0: i32, %arg1: i32, %arg2: memref<256x128xf32, #tpu.memory_space<vmem>>, %arg3: memref<128x128xf32, #tpu.memory_space<vmem>>, %arg4: memref<1x128x256xbf16, #tpu.memory_space<vmem>>, %arg5: memref<1x128x128xf32, #tpu.memory_space<vmem>>, %arg6: memref<128x128xf32, #tpu.memory_space<vmem>>, %arg7: memref<128x128xf32, #tpu.memory_space<vmem>>, %arg8: memref<128x128xf32, #tpu.memory_space<vmem>>, %arg9: memref<128x128xf32, #tpu.memory_space<vmem>>, %arg10: memref<128x128xf32, #tpu.memory_space<vmem>>) attributes {dimension_semantics = [#tpu.dimension_semantics<parallel>, #tpu.dimension_semantics<arbitrary>], iteration_bounds = array<i64: 2, 3>, scalar_prefetch = 0 : i64, scratch_operands = 1 : i64, tpu.core_type = #tpu.core_type<tc>, window_params = [{pipeline_mode = #tpu.pipeline_mode<synchronous>, transform_indices = @transform_0, window_bounds = array<i64: 256, 128>}, {transform_indices = @transform_1, window_bounds = array<i64: 128, 128>}, {transform_indices = @transform_2, window_bounds = array<i64: 1, 128, 256>}, {transform_indices = @transform_3, window_bounds = array<i64: 1, 128, 128>}, {pipeline_mode = #tpu.pipeline_mode<synchronous>, transform_indices = @transform_4, window_bounds = array<i64: 128, 128>}, {pipeline_mode = #tpu.pipeline_mode<synchronous>, transform_indices = @transform_5, window_bounds = array<i64: 128, 128>}, {pipeline_mode = #tpu.pipeline_mode<synchronous>, transform_indices = @transform_6, window_bounds = array<i64: 128, 128>}, {transform_indices = @transform_7, window_bounds = array<i64: 128, 128>}]} {
    %c0_i32 = arith.constant 0 : i32
    %0 = arith.cmpi eq, %arg1, %c0_i32 : i32
    %1 = arith.extui %0 : i1 to i32
    %c0_i32_0 = arith.constant 0 : i32
    %2 = arith.cmpi ne, %1, %c0_i32_0 : i32
    scf.if %2 {
      %cst_14 = arith.constant 0.000000e+00 : f32
      %17 = vector.broadcast %cst_14 : f32 to vector<128x128xf32>
      %c0_15 = arith.constant 0 : index
      %c0_16 = arith.constant 0 : index
      %18 = vector.load %arg10[%c0_15, %c0_16] : memref<128x128xf32, #tpu.memory_space<vmem>>, vector<128x128xf32>
      tpu.vector_store %arg10[%c0_15, %c0_16], %17 {strides = array<i32>} : memref<128x128xf32, #tpu.memory_space<vmem>>, vector<128x128xf32>,
    } else {
    }
    %c0 = arith.constant 0 : index
    %c0_1 = arith.constant 0 : index
    %c0_2 = arith.constant 0 : index
    %3 = vector.load %arg4[%c0, %c0_1, %c0_2] : memref<1x128x256xbf16, #tpu.memory_space<vmem>>, vector<1x128x256xbf16>
    %4 = vector.shape_cast %3 : vector<1x128x256xbf16> to vector<128x256xbf16>
    %5 = arith.extf %4 : vector<128x256xbf16> to vector<128x256xf32>
    %c0_3 = arith.constant 0 : index
    %c0_4 = arith.constant 0 : index
    %6 = vector.load %arg2[%c0_3, %c0_4] : memref<256x128xf32, #tpu.memory_space<vmem>>, vector<256x128xf32>
    %cst = arith.constant dense<0.000000e+00> : vector<128x128xf32>
    %7 = tpu.matmul %5, %6, %cst {dimension_numbers = #tpu.dot_dimension_numbers<[1], [0], [0], [1], [0, 0, 1, 1], [], []>} : vector<128x256xf32>, vector<256x128xf32>, vector<128x128xf32> -> vector<128x128xf32>
    %c0_5 = arith.constant 0 : index
    %c0_6 = arith.constant 0 : index
    %8 = vector.load %arg10[%c0_5, %c0_6] : memref<128x128xf32, #tpu.memory_space<vmem>>, vector<128x128xf32>
    %c0_7 = arith.constant 0 : index
    %c0_8 = arith.constant 0 : index
    %c0_9 = arith.constant 0 : index
    %9 = vector.load %arg5[%c0_7, %c0_8, %c0_9] : memref<1x128x128xf32, #tpu.memory_space<vmem>>, vector<1x128x128xf32>
    %10 = vector.shape_cast %9 : vector<1x128x128xf32> to vector<128x128xf32>
    %cst_10 = arith.constant dense<0.000000e+00> : vector<128x128xf32>
    %11 = tpu.matmul %7, %10, %cst_10 {dimension_numbers = #tpu.dot_dimension_numbers<[1], [0], [0], [1], [0, 0, 1, 1], [], []>} : vector<128x128xf32>, vector<128x128xf32>, vector<128x128xf32> -> vector<128x128xf32>
    %12 = arith.addf %8, %11 : vector<128x128xf32>
    %c0_11 = arith.constant 0 : index
    %c0_12 = arith.constant 0 : index
    %13 = vector.load %arg10[%c0_11, %c0_12] : memref<128x128xf32, #tpu.memory_space<vmem>>, vector<128x128xf32>
    tpu.vector_store %arg10[%c0_11, %c0_12], %12 {strides = array<i32>} : memref<128x128xf32, #tpu.memory_space<vmem>>, vector<128x128xf32>,
    %c2_i32 = arith.constant 2 : i32
    %14 = arith.cmpi eq, %arg1, %c2_i32 : i32
    %15 = arith.extui %14 : i1 to i32
    %c0_i32_13 = arith.constant 0 : i32
    %16 = arith.cmpi ne, %15, %c0_i32_13 : i32
    scf.if %16 {
      %c0_14 = arith.constant 0 : index
      %c0_15 = arith.constant 0 : index
      %17 = vector.load %arg3[%c0_14, %c0_15] : memref<128x128xf32, #tpu.memory_space<vmem>>, vector<128x128xf32>
      %c0_16 = arith.constant 0 : index
      %c0_17 = arith.constant 0 : index
      %18 = vector.load %arg10[%c0_16, %c0_17] : memref<128x128xf32, #tpu.memory_space<vmem>>, vector<128x128xf32>
      %cst_18 = arith.constant 0.00392156886 : f32
      %19 = vector.broadcast %cst_18 : f32 to vector<128x128xf32>
      %20 = arith.mulf %18, %19 : vector<128x128xf32>
      %c0_19 = arith.constant 0 : index
      %c0_20 = arith.constant 0 : index
      %21 = vector.load %arg6[%c0_19, %c0_20] : memref<128x128xf32, #tpu.memory_space<vmem>>, vector<128x128xf32>
      %cst_21 = arith.constant dense<0.000000e+00> : vector<128x128xf32>
      %22 = tpu.matmul %17, %21, %cst_21 {dimension_numbers = #tpu.dot_dimension_numbers<[1], [0], [0], [1], [0, 0, 1, 1], [], []>} : vector<128x128xf32>, vector<128x128xf32>, vector<128x128xf32> -> vector<128x128xf32>
      %23 = arith.addf %20, %22 : vector<128x128xf32>
      %c0_22 = arith.constant 0 : index
      %c0_23 = arith.constant 0 : index
      %24 = vector.load %arg7[%c0_22, %c0_23] : memref<128x128xf32, #tpu.memory_space<vmem>>, vector<128x128xf32>
      %cst_24 = arith.constant dense<0.000000e+00> : vector<128x128xf32>
      %25 = tpu.matmul %23, %24, %cst_24 {dimension_numbers = #tpu.dot_dimension_numbers<[1], [0], [0], [1], [0, 0, 1, 1], [], []>} : vector<128x128xf32>, vector<128x128xf32>, vector<128x128xf32> -> vector<128x128xf32>
      %c0_25 = arith.constant 0 : index
      %c0_26 = arith.constant 0 : index
      %26 = vector.load %arg8[%c0_25, %c0_26] : memref<128x128xf32, #tpu.memory_space<vmem>>, vector<128x128xf32>
      %cst_27 = arith.constant dense<0.000000e+00> : vector<128x128xf32>
      %27 = tpu.matmul %17, %26, %cst_27 {dimension_numbers = #tpu.dot_dimension_numbers<[1], [0], [0], [1], [0, 0, 1, 1], [], []>} : vector<128x128xf32>, vector<128x128xf32>, vector<128x128xf32> -> vector<128x128xf32>
      %28 = arith.addf %25, %27 : vector<128x128xf32>
      %29 = arith.negf %28 : vector<128x128xf32>
      %30 = math.exp %29 : vector<128x128xf32>
      %cst_28 = arith.constant 1.000000e+00 : f32
      %31 = vector.broadcast %cst_28 : f32 to vector<128x128xf32>
      %32 = arith.addf %31, %30 : vector<128x128xf32>
      %33 = arith.divf %31, %32 : vector<128x128xf32>
      %34 = math.tanh %23 : vector<128x128xf32>
      %35 = arith.mulf %34, %33 : vector<128x128xf32>
      %cst_29 = arith.constant 1.000000e+00 : f32
      %36 = vector.broadcast %cst_29 : f32 to vector<128x128xf32>
      %37 = arith.subf %36, %33 : vector<128x128xf32>
      %38 = arith.mulf %17, %37 : vector<128x128xf32>
      %39 = arith.addf %35, %38 : vector<128x128xf32>
      %c0_30 = arith.constant 0 : index
      %c0_31 = arith.constant 0 : index
      %40 = vector.load %arg9[%c0_30, %c0_31] : memref<128x128xf32, #tpu.memory_space<vmem>>, vector<128x128xf32>
      tpu.vector_store %arg9[%c0_30, %c0_31], %39 {strides = array<i32>} : memref<128x128xf32, #tpu.memory_space<vmem>>, vector<128x128xf32>,
    } else {
    }
    return
  }
  func.func @transform_0(%arg0: i32, %arg1: i32) -> (i32, i32) {
    %c0_i32 = arith.constant 0 : i32
    %c0_i32_0 = arith.constant 0 : i32
    %c0_i32_1 = arith.constant 0 : i32
    return %c0_i32, %c0_i32_0 : i32, i32
  }
  func.func @transform_1(%arg0: i32, %arg1: i32) -> (i32, i32) {
    %c0_i32 = arith.constant 0 : i32
    %c0_i32_0 = arith.constant 0 : i32
    return %arg0, %c0_i32 : i32, i32
  }
  func.func @transform_2(%arg0: i32, %arg1: i32) -> (i32, i32, i32) {
    %c0_i32 = arith.constant 0 : i32
    %c0_i32_0 = arith.constant 0 : i32
    return %arg1, %arg0, %c0_i32 : i32, i32, i32
  }
  func.func @transform_3(%arg0: i32, %arg1: i32) -> (i32, i32, i32) {
    %c0_i32 = arith.constant 0 : i32
    %c0_i32_0 = arith.constant 0 : i32
    %c0_i32_1 = arith.constant 0 : i32
    return %arg1, %c0_i32, %c0_i32_0 : i32, i32, i32
  }
  func.func @transform_4(%arg0: i32, %arg1: i32) -> (i32, i32) {
    %c0_i32 = arith.constant 0 : i32
    %c0_i32_0 = arith.constant 0 : i32
    %c0_i32_1 = arith.constant 0 : i32
    return %c0_i32, %c0_i32_0 : i32, i32
  }
  func.func @transform_5(%arg0: i32, %arg1: i32) -> (i32, i32) {
    %c0_i32 = arith.constant 0 : i32
    %c0_i32_0 = arith.constant 0 : i32
    %c0_i32_1 = arith.constant 0 : i32
    return %c0_i32, %c0_i32_0 : i32, i32
  }
  func.func @transform_6(%arg0: i32, %arg1: i32) -> (i32, i32) {
    %c0_i32 = arith.constant 0 : i32
    %c0_i32_0 = arith.constant 0 : i32
    %c0_i32_1 = arith.constant 0 : i32
    return %c0_i32, %c0_i32_0 : i32, i32
  }
  func.func @transform_7(%arg0: i32, %arg1: i32) -> (i32, i32) {
    %c0_i32 = arith.constant 0 : i32
    %c0_i32_0 = arith.constant 0 : i32
    return %arg0, %c0_i32 : i32, i32
  }
}

</mosaic_0001>

<bundles_post_ra>
// kernel: rgcn_layer.1
= control target key start
LH: loop header
LB: loop body
LE: loop exit
PB: predicated region body
PF: predicated region fallthrough
CT: control target
= control target key end

     0   :  { %12 = vsyncpa [#allocation4], 0  ;;  %s2825_s0 = inlined_call_operand.vmem [shape: f32[256,128], index: 0, kind: input, shape index: {}, may-alias: {0,1}]   ;;  %s2826_s1 = inlined_call_operand.vmem [shape: f32[256,128], index: 1, kind: input, shape index: {}, may-alias: {0,1}]   ;;  %s2827_s2 = inlined_call_operand.vmem [shape: bf16[3,256,256], index: 2, kind: input, shape index: {}]   ;;  %s2828_s3 = inlined_call_operand.vmem [shape: f32[3,128,128], index: 3, kind: input, shape index: {}]   ;;  %s2829_s4 = inlined_call_operand.vmem [shape: f32[128,128], index: 4, kind: input, shape index: {}]   ;;  %s2830_s5 = inlined_call_operand.vmem [shape: f32[128,128], index: 5, kind: input, shape index: {}]   ;;  %s2831_s6 = inlined_call_operand.vmem [shape: f32[128,128], index: 6, kind: input, shape index: {}]   ;;  %s2832_s7 = inlined_call_operand.hbm [shape: f32[256,128], index: 7, kind: output, shape index: {}]  }
   0x1   :  { %14 = vsyncpa [#allocation4 + $0x1], 0  ;;  %s1994_s24 = smov 0   ;;  %s1996_s25 = smov 0  }
   0x2   :  { %s1998_s26 = smov 0   ;;  %s2000_s27 = smov 0  }
   0x3   :  { %s2002_s28 = smov 0   ;;  %s2004_s29 = smov 0  }
   0x4   :  { %s2006_s30 = smov 0   ;;  %s2008_s8 = smov 0  }
   0x5 LB: > { %2840 = sst [smem:[#allocation6_spill]] %s1921_s24  ;;  %s1543_s9 = sadd.s32 4294967295, %s1949_s8   ;;  %s1949_s8 = sphi %s2008_s8, %s20_s8   ;;  %s1945_s30 = sphi %s2006_s30, %s2882_s30   ;;  %s1941_s29 = sphi %s2004_s29, %s2881_s29   ;;  %s1937_s28 = sphi %s2002_s28, %s2880_s28   ;;  %s1933_s27 = sphi %s2000_s27, %s2879_s27   ;;  %s1929_s26 = sphi %s1998_s26, %s2878_s26   ;;  %s1925_s25 = sphi %s1996_s25, %s2884_s25   ;;  %s1921_s24 = sphi %s1994_s24, %s2883_s24  }
   0x6   : > { %2841 = sst [smem:[#allocation7_spill]] %s1929_s26  ;;  %s1544_s10 = sadd.s32 4294967294, %s1949_s8  }
   0x7   : > { %2842 = sst [smem:[#allocation8_spill]] %s1941_s29  ;;  %s29_s11 = sadd.s32 1, %s1941_s29 }
   0x8   : > { %2843 = sst [smem:[#allocation9_spill]] %s1945_s30  ;;  %p30_p0 = scmp.ge.s32.totalorder %s29_s11, 3 }
   0x9   : > { %s32_s12 = sadd.s32 1, %s1945_s30  ;;  %p213_p1 = scmp.ne.s32.totalorder %s1929_s26, %s1925_s25 }
   0xa   : > { %p214_p2 = scmp.eq.s32.totalorder %s1543_s9, 5  ;;  %s2886_s11 = smov (%p30_p0, %s29_s11), 0 }
   0xb   : > { %2844 = sst [smem:[#allocation10_spill]] %s2886_s11  ;;  %s2888_s12 = smov (!%p30_p0, %s32_s12), %s1945_s30 }
   0xc   : > { %p2043_p3 = por %p214_p2, %p213_p1  ;;  %p219_p4 = scmp.ne.s32.totalorder %s1925_s25, %s1921_s24 }
   0xd   : > { %p34_p5 = scmp.ge.s32.totalorder %s2888_s12, 2  ;;  %p220_p6 = scmp.eq.s32.totalorder %s1544_s10, 5 }
   0xe   : > { %p1547_p7 = scmp.ge.s32.totalorder %s1949_s8, 1  ;;  %p281_p8 = scmp.lt.s32.totalorder %s1949_s8, 7 }
   0xf   : > { %s2890_s12 = smov (%p34_p5, %s2888_s12), 0  ;;  %p2053_p9 = por %p220_p6, %p219_p4 }
  0x10   : > { %2846 = sst [smem:[#allocation11_spill]] %s2890_s12  ;;  %p282_p10 = pnand %p1547_p7, %p281_p8 }
  0x11   : > { %s2847_s14 = scalar_select %p2053_p9, 1, 0 }
  0x12   : > { %s200_s15 = ssub.s32 %s1945_s30, %s2890_s12  ;;  %s203_s16 = sadd.s32 1, %s1929_s26 }
  0x13   : > { %2848 = sst [smem:[#allocation12_spill]] %s2847_s14  ;;  %p201_p11 = scmp.eq.s32.totalorder %s200_s15, 0 }
  0x14   : > { %285 = sbr.rel (%p282_p10) target bundleno = 871 (0x367), region = 48  ;;  %s2837_s18 = sand.u32 (!%p282_p10), 1, %s1925_s25  }
  0x15   : > { %s2061_s17 = scalar_select %p201_p11, %s1929_s26, %s203_s16  }
  0x16   : > { %s1549_s19 = sshll.u32 (!%p282_p10), %s1937_s28, 4  ;;  %s1548_s20 = sshll.u32 (!%p282_p10), %s2837_s18, 7 }
  0x17   : > { %2849 = sst [smem:[#allocation13_spill]] %s2061_s17  ;;  %p329_p12 = scmp.lt.s32.totalorder (!%p282_p10), %s1549_s19, 31 }
  0x18   : > { %p335_p13 = scmp.lt.s32.totalorder (!%p282_p10), %s1933_s27, 2  ;;  %p1557_p0 = scmp.ne.s32.totalorder (!%p282_p10), %s1933_s27, 0 }
  0x19   : > { %s2892_s19 = smov (!%p329_p12, %s1549_s19), 31 }
  0x1a   : > { %s336_s21 = scalar_select %p335_p13, %s1933_s27, 2 }
  0x1b   : > { %s1550_s22 = sshll.u32 %s2892_s19, 3  ;;  %s1552_s23 = sshll.u32 %s2892_s19, 1 }
  0x1c   : > { %s2072_s15 = scalar_lea.vmem %s2826_s1, %s1550_s22  ;;  %s1553_s16 = sshll.u32 %s336_s21, 6 }
  0x1d   : > { %s341_s12 = sadd.s32 %s1553_s16, %s1552_s23  ;;  %s1580_s11 = sshll.u32 %s336_s21, 7 }
  0x1e   : > { %s1554_s30 = sshll.u32 %s341_s12, 2  ;;  %s2077_s26 = scalar_lea.vmem %s2828_s3, %s1580_s11 }
  0x1f   : > { %s2082_s24 = scalar_lea.vmem %s2827_s2, %s1554_s30  ;;  %s2084_s19 = scalar_lea.vmem [#allocation3], %s1548_s20 }
  0x20   : > { %354 = sbr.rel (%p1557_p0) target bundleno = 54 (0x36), region = 52 }
  0x25   : > { %v1951_v0 = vmov 0.0  }
  0x26   : > { %355 = vst [vmem:[#allocation2 + $0x30] sm:$0xff] %v1951_v0 }
  0x27   : > { %356 = vst [vmem:[#allocation2] sm:$0xff] %v1951_v0 }
  0x28   : > { %357 = vst [vmem:[#allocation2 + $0x58] sm:$0xff] %v1951_v0 }
  0x29   : > { %358 = vst [vmem:[#allocation2 + $0x18] sm:$0xff] %v1951_v0 }
  0x2a   : > { %359 = vst [vmem:[#allocation2 + $0x50] sm:$0xff] %v1951_v0 }
  0x2b   : > { %360 = vst [vmem:[#allocation2 + $0x68] sm:$0xff] %v1951_v0 }
  0x2c   : > { %361 = vst [vmem:[#allocation2 + $0x8] sm:$0xff] %v1951_v0 }
  0x2d   : > { %362 = vst [vmem:[#allocation2 + $0x48] sm:$0xff] %v1951_v0 }
  0x2e   : > { %363 = vst [vmem:[#allocation2 + $0x40] sm:$0xff] %v1951_v0 }
  0x2f   : > { %364 = vst [vmem:[#allocation2 + $0x20] sm:$0xff] %v1951_v0 }
  0x30   : > { %365 = vst [vmem:[#allocation2 + $0x10] sm:$0xff] %v1951_v0 }
  0x31   : > { %366 = vst [vmem:[#allocation2 + $0x38] sm:$0xff] %v1951_v0 }
  0x32   : > { %367 = vst [vmem:[#allocation2 + $0x60] sm:$0xff] %v1951_v0 }
  0x33   : > { %368 = vst [vmem:[#allocation2 + $0x70] sm:$0xff] %v1951_v0 }
  0x34   : > { %369 = vst [vmem:[#allocation2 + $0x78] sm:$0xff] %v1951_v0 }
  0x35   : > { %370 = vst [vmem:[#allocation2 + $0x28] sm:$0xff] %v1951_v0 }
  0x36 PF: > { %v434_v1 = vld [vmem:[%s2825_s0 + $0x78] sm:$0xff]  ;;  %v433_v3 = vld [vmem:[%s2825_s0 + $0x70] sm:$0xff]  ;;  %v432_v5 = vld [vmem:[%s2825_s0 + $0x68] sm:$0xff]  ;;  %p1558_p1 = scmp.ne.s32.totalorder %s1933_s27, 2 }
  0x37   : > { %v2093_v2 = vld [vmem:[%s2825_s0 + $0xf8] sm:$0xff]  ;;  %451 = vmatpush.msra.mxu0 %v434_v1  ;;  %1582 = vmatpush.msra.mxu3 %v434_v1  ;;  %v2101_v4 = vld [vmem:[%s2825_s0 + $0xf0] sm:$0xff]  ;;  %v2110_v6 = vld [vmem:[%s2825_s0 + $0xe8] sm:$0xff] }
  0x38   : > { %516 = vmatpush.msra.mxu1 %v2093_v2  ;;  %v431_v7 = vld [vmem:[%s2825_s0 + $0x60] sm:$0xff]  ;;  %v430_v9 = vld [vmem:[%s2825_s0 + $0x58] sm:$0xff]  ;;  %v429_v11 = vld [vmem:[%s2825_s0 + $0x50] sm:$0xff] }
  0x39   : > { %452 = vmatpush.msra.mxu0 %v433_v3  ;;  %1583 = vmatpush.msra.mxu3 %v433_v3  ;;  %v2119_v8 = vld [vmem:[%s2825_s0 + $0xe0] sm:$0xff]  ;;  %v2128_v10 = vld [vmem:[%s2825_s0 + $0xd8] sm:$0xff]  ;;  %v2137_v12 = vld [vmem:[%s2825_s0 + $0xd0] sm:$0xff] }
  0x3a   : > { %517 = vmatpush.msra.mxu1 %v2101_v4  ;;  %v428_v13 = vld [vmem:[%s2825_s0 + $0x48] sm:$0xff]  ;;  %v427_v15 = vld [vmem:[%s2825_s0 + $0x40] sm:$0xff]  ;;  %v426_v17 = vld [vmem:[%s2825_s0 + $0x38] sm:$0xff] }
  0x3b   : > { %453 = vmatpush.msra.mxu0 %v432_v5  ;;  %1584 = vmatpush.msra.mxu3 %v432_v5  ;;  %v2146_v14 = vld [vmem:[%s2825_s0 + $0xc8] sm:$0xff]  ;;  %v2155_v16 = vld [vmem:[%s2825_s0 + $0xc0] sm:$0xff]  ;;  %v2164_v18 = vld [vmem:[%s2825_s0 + $0xb8] sm:$0xff] }
  0x3c   : > { %518 = vmatpush.msra.mxu1 %v2110_v6  ;;  %v425_v19 = vld [vmem:[%s2825_s0 + $0x30] sm:$0xff]  ;;  %v424_v21 = vld [vmem:[%s2825_s0 + $0x28] sm:$0xff]  ;;  %v423_v23 = vld [vmem:[%s2825_s0 + $0x20] sm:$0xff] }
  0x3d   : > { %454 = vmatpush.msra.mxu0 %v431_v7  ;;  %1585 = vmatpush.msra.mxu3 %v431_v7  ;;  %v2173_v20 = vld [vmem:[%s2825_s0 + $0xb0] sm:$0xff]  ;;  %v2182_v22 = vld [vmem:[%s2825_s0 + $0xa8] sm:$0xff]  ;;  %v2191_v24 = vld [vmem:[%s2825_s0 + $0xa0] sm:$0xff] }
  0x3e   : > { %519 = vmatpush.msra.mxu1 %v2119_v8  ;;  %v422_v25 = vld [vmem:[%s2825_s0 + $0x18] sm:$0xff]  ;;  %v421_v27 = vld [vmem:[%s2825_s0 + $0x10] sm:$0xff]  ;;  %v371_v29 = vld [vmem:[%s2082_s24] sm:$0xff] }
  0x3f   : > { %455 = vmatpush.msra.mxu0 %v430_v9  ;;  %1586 = vmatpush.msra.mxu3 %v430_v9  ;;  %v2200_v26 = vld [vmem:[%s2825_s0 + $0x98] sm:$0xff]  ;;  %v437_v28 = vld [vmem:[%s2825_s0 + $0x90] sm:$0xff]  ;;  %v420_v30 = vld [vmem:[%s2825_s0 + $0x8] sm:$0xff]  ;;  %v387_v34 = vunpack.c.l.bf16 %v371_v29  ;;  %v388_v37 = vunpack.c.h.bf16 %v371_v29 }
  0x40   : > { %520 = vmatpush.msra.mxu1 %v2128_v10  ;;  %v2215_v31 = vld [vmem:[%s2082_s24 + $0x60] sm:$0xff]  ;;  %v436_v32 = vld [vmem:[%s2825_s0 + $0x88] sm:$0xff]  ;;  %v373_v43 = vld [vmem:[%s2082_s24 + $0x10] sm:$0xff] }
  0x41   : > { %456 = vmatpush.msra.mxu0 %v429_v11  ;;  %1587 = vmatpush.msra.mxu3 %v429_v11  ;;  %v419_v33 = vld [vmem:[%s2825_s0] sm:$0xff]  ;;  %v411_v36 = vunpack.c.l.bf16 %v2215_v31  ;;  %v372_v38 = vld [vmem:[%s2082_s24 + $0x8] sm:$0xff]  ;;  %v385_v44 = vld [vmem:[%s2082_s24 + $0x70] sm:$0xff]  ;;  %v391_v45 = vunpack.c.l.bf16 %v373_v43  ;;  %v392_v47 = vunpack.c.h.bf16 %v373_v43  ;;  %v412_v55 = vunpack.c.h.bf16 %v2215_v31 }
  0x42   : > { %521 = vmatpush.msra.mxu1 %v2137_v12  ;;  %v435_v35 = vld [vmem:[%s2825_s0 + $0x80] sm:$0xff]  ;;  %v384_v39 = vld [vmem:[%s2082_s24 + $0x68] sm:$0xff]  ;;  %v389_v40 = vunpack.c.l.bf16 %v372_v38  ;;  %v390_v42 = vunpack.c.h.bf16 %v372_v38  ;;  %v415_v46 = vunpack.c.l.bf16 %v385_v44  ;;  %v374_v48 = vld [vmem:[%s2082_s24 + $0x18] sm:$0xff]  ;;  %v416_v0 = vunpack.c.h.bf16 %v385_v44 }
  0x43   : > { %457 = vmatpush.msra.mxu0 %v428_v13  ;;  %1588 = vmatpush.msra.mxu3 %v428_v13  ;;  %v413_v41 = vunpack.c.l.bf16 %v384_v39  ;;  %v386_v49 = vld [vmem:[%s2082_s24 + $0x78] sm:$0xff]  ;;  %v393_v50 = vunpack.c.l.bf16 %v374_v48  ;;  %v394_v52 = vunpack.c.h.bf16 %v374_v48  ;;  %v375_v53 = vld [vmem:[%s2082_s24 + $0x20] sm:$0xff]  ;;  %v376_v57 = vld [vmem:[%s2082_s24 + $0x28] sm:$0xff]  ;;  %v414_v60 = vunpack.c.h.bf16 %v384_v39 }
  0x44   : > { %522 = vmatpush.msra.mxu1 %v2146_v14  ;;  %v417_v51 = vunpack.c.l.bf16 %v386_v49  ;;  %v395_v54 = vunpack.c.l.bf16 %v375_v53  ;;  %v396_v56 = vunpack.c.h.bf16 %v375_v53  ;;  %v397_v58 = vunpack.c.l.bf16 %v376_v57  ;;  %v377_v61 = vld [vmem:[%s2082_s24 + $0x30] sm:$0xff]  ;;  %v378_v1 = vld [vmem:[%s2082_s24 + $0x38] sm:$0xff]  ;;  %v379_v5 = vld [vmem:[%s2082_s24 + $0x40] sm:$0xff] }
  0x45   : > { %458 = vmatpush.msra.mxu0 %v427_v15  ;;  %1589 = vmatpush.msra.mxu3 %v427_v15  ;;  %v398_v59 = vunpack.c.h.bf16 %v376_v57  ;;  %v399_v62 = vunpack.c.l.bf16 %v377_v61  ;;  %v400_v63 = vunpack.c.h.bf16 %v377_v61  ;;  %v402_v3 = vunpack.c.h.bf16 %v378_v1  ;;  %v611_v7 = vld [vmem:[%s2077_s26 + $0x70] sm:$0xff]  ;;  %v609_v11 = vld [vmem:[%s2077_s26 + $0x60] sm:$0xff]  ;;  %v380_v13 = vld [vmem:[%s2082_s24 + $0x48] sm:$0xff] }
  0x46   : > { %523 = vmatpush.msra.mxu1 %v2155_v16  ;;  %v403_v9 = vunpack.c.l.bf16 %v379_v5  ;;  %v606_v15 = vld [vmem:[%s2077_s26 + $0x48] sm:$0xff] }
  0x47   : > { %459 = vmatpush.msra.mxu0 %v426_v17  ;;  %1590 = vmatpush.msra.mxu3 %v426_v17  ;;  %v406_v17 = vunpack.c.h.bf16 %v380_v13  ;;  %v598_v31 = vld [vmem:[%s2077_s26 + $0x8] sm:$0xff] }
  0x48   : > { %524 = vmatpush.msra.mxu1 %v2164_v18 }
  0x49   : > { %460 = vmatpush.msra.mxu0 %v425_v19  ;;  %1591 = vmatpush.msra.mxu3 %v425_v19  ;;  %v604_v19 = vld [vmem:[%s2077_s26 + $0x38] sm:$0xff] }
  0x4a   : > { %525 = vmatpush.msra.mxu1 %v2173_v20 }
  0x4b   : > { %461 = vmatpush.msra.mxu0 %v424_v21  ;;  %1592 = vmatpush.msra.mxu3 %v424_v21  ;;  %v603_v21 = vld [vmem:[%s2077_s26 + $0x30] sm:$0xff] }
  0x4c   : > { %526 = vmatpush.msra.mxu1 %v2182_v22 }
  0x4d   : > { %462 = vmatpush.msra.mxu0 %v423_v23  ;;  %1593 = vmatpush.msra.mxu3 %v423_v23 }
  0x4e   : > { %527 = vmatpush.msra.mxu1 %v2191_v24 }
  0x4f   : > { %463 = vmatpush.msra.mxu0 %v422_v25  ;;  %1594 = vmatpush.msra.mxu3 %v422_v25  ;;  %v601_v25 = vld [vmem:[%s2077_s26 + $0x20] sm:$0xff] }
  0x50   : > { %528 = vmatpush.msra.mxu1 %v2200_v26 }
  0x51   : > { %464 = vmatpush.msra.mxu0 %v421_v27  ;;  %1595 = vmatpush.msra.mxu3 %v421_v27  ;;  %v382_v27 = vld [vmem:[%s2082_s24 + $0x58] sm:$0xff] }
  0x52   : > { %529 = vmatpush.msra.mxu1 %v437_v28  ;;  %v409_v29 = vunpack.c.l.bf16 %v382_v27 }
  0x53   : > { %465 = vmatpush.msra.mxu0 %v420_v30  ;;  %1596 = vmatpush.msra.mxu3 %v420_v30  ;;  %v410_v30 = vunpack.c.h.bf16 %v382_v27 }
  0x54   : > { %530 = vmatpush.msra.mxu1 %v436_v32 }
  0x55   : > { %466 = vmatpush.msra.mxu0 %v419_v33  ;;  %1597 = vmatpush.msra.mxu3 %v419_v33 }
  0x56   : > { %531 = vmatpush.msra.mxu1 %v435_v35  ;;  %467 = vmatmul.f32.vlgmr.msra.gmra.mxu0 %v387_v34 }
  0x57   : > { %503 = vmatmul.f32.vlgmr.msra.gmra.mxu3 %v411_v36  ;;  %532 = vmatmul.f32.vlgmr.msra.gmra.mxu1 %v388_v37 }
  0x58   : > { %1598 = vmatpush.msrb.mxu3 %v2093_v2  ;;  %v401_v2 = vunpack.c.l.bf16 %v378_v1 }
  0x5a   : > { %1599 = vmatpush.msrb.mxu3 %v2101_v4  ;;  %v418_v4 = vunpack.c.h.bf16 %v386_v49 }
  0x5c   : > { %1600 = vmatpush.msrb.mxu3 %v2110_v6  ;;  %v612_v6 = vld [vmem:[%s2077_s26 + $0x78] sm:$0xff] }
  0x5d   : > { %613 = vmatpush.msra.mxu2 %v612_v6 }
  0x5e   : > { %1601 = vmatpush.msrb.mxu3 %v2119_v8  ;;  %470 = vmatmul.f32.gmra.mxu0 %v389_v40  ;;  %v610_v8 = vld [vmem:[%s2077_s26 + $0x68] sm:$0xff] }
  0x5f   : > { %506 = vmatmul.f32.gmra.mxu3 %v413_v41  ;;  %535 = vmatmul.f32.gmra.mxu1 %v390_v42 }
  0x60   : > { %1602 = vmatpush.msrb.mxu3 %v2128_v10  ;;  %614 = vmatpush.msra.mxu2 %v611_v7  ;;  %v404_v10 = vunpack.c.h.bf16 %v379_v5 }
  0x62   : > { %1603 = vmatpush.msrb.mxu3 %v2137_v12  ;;  %615 = vmatpush.msra.mxu2 %v610_v8  ;;  %v608_v12 = vld [vmem:[%s2077_s26 + $0x58] sm:$0xff] }
  0x64   : > { %1604 = vmatpush.msrb.mxu3 %v2146_v14  ;;  %616 = vmatpush.msra.mxu2 %v609_v11  ;;  %v607_v14 = vld [vmem:[%s2077_s26 + $0x50] sm:$0xff] }
  0x66   : > { %1605 = vmatpush.msrb.mxu3 %v2155_v16  ;;  %473 = vmatmul.f32.gmra.mxu0 %v391_v45  ;;  %v405_v16 = vunpack.c.l.bf16 %v380_v13 }
  0x67   : > { %509 = vmatmul.f32.gmra.mxu3 %v415_v46  ;;  %538 = vmatmul.f32.gmra.mxu1 %v392_v47 }
  0x68   : > { %1606 = vmatpush.msrb.mxu3 %v2164_v18  ;;  %617 = vmatpush.msra.mxu2 %v608_v12  ;;  %v605_v18 = vld [vmem:[%s2077_s26 + $0x40] sm:$0xff] }
  0x6a   : > { %1607 = vmatpush.msrb.mxu3 %v2173_v20  ;;  %618 = vmatpush.msra.mxu2 %v607_v14  ;;  %v381_v20 = vld [vmem:[%s2082_s24 + $0x50] sm:$0xff] }
  0x6b   : > { %v407_v23 = vunpack.c.l.bf16 %v381_v20 }
  0x6c   : > { %1608 = vmatpush.msrb.mxu3 %v2182_v22  ;;  %619 = vmatpush.msra.mxu2 %v606_v15  ;;  %v602_v22 = vld [vmem:[%s2077_s26 + $0x28] sm:$0xff] }
  0x6e   : > { %1609 = vmatpush.msrb.mxu3 %v2191_v24  ;;  %476 = vmatmul.f32.gmra.mxu0 %v393_v50  ;;  %v408_v24 = vunpack.c.h.bf16 %v381_v20  ;;  %v582_v20 = vld [vmem:[#allocation2] sm:$0xff] }
  0x6f   : > { %512 = vmatmul.f32.gmra.mxu3 %v417_v51  ;;  %541 = vmatmul.f32.gmra.mxu1 %v394_v52 }
  0x70   : > { %1610 = vmatpush.msrb.mxu3 %v2200_v26  ;;  %620 = vmatpush.msra.mxu2 %v605_v18  ;;  %v600_v26 = vld [vmem:[%s2077_s26 + $0x18] sm:$0xff] }
  0x72   : > { %1611 = vmatpush.msrb.mxu3 %v437_v28  ;;  %621 = vmatpush.msra.mxu2 %v604_v19  ;;  %v599_v28 = vld [vmem:[%s2077_s26 + $0x10] sm:$0xff] }
  0x74   : > { %1612 = vmatpush.msrb.mxu3 %v436_v32  ;;  %622 = vmatpush.msra.mxu2 %v603_v21  ;;  %v597_v32 = vld [vmem:[%s2077_s26] sm:$0xff] }
  0x76   : > { %1613 = vmatpush.msrb.mxu3 %v435_v35  ;;  %479 = vmatmul.f32.gmra.mxu0 %v395_v54 }
  0x77   : > { %544 = vmatmul.f32.gmra.mxu1 %v396_v56  ;;  %568 = vmatmul.f32.vlgmr.msrb.gmra.mxu3 %v412_v55 }
  0x78   : > { %1614 = vmatpush.msra.mxu3 %v612_v6  ;;  %623 = vmatpush.msra.mxu2 %v602_v22 }
  0x7a   : > { %1615 = vmatpush.msra.mxu3 %v611_v7  ;;  %624 = vmatpush.msra.mxu2 %v601_v25 }
  0x7c   : > { %1616 = vmatpush.msra.mxu3 %v610_v8  ;;  %625 = vmatpush.msra.mxu2 %v600_v26 }
  0x7e   : > { %482 = vmatmul.f32.gmra.mxu0 %v397_v58  ;;  %1617 = vmatpush.msra.mxu3 %v609_v11 }
  0x7f   : > { %547 = vmatmul.f32.gmra.mxu1 %v398_v59  ;;  %571 = vmatmul.f32.gmra.mxu3 %v414_v60 }
  0x80   : > { %1618 = vmatpush.msra.mxu3 %v608_v12  ;;  %626 = vmatpush.msra.mxu2 %v599_v28 }
  0x82   : > { %1619 = vmatpush.msra.mxu3 %v607_v14  ;;  %627 = vmatpush.msra.mxu2 %v598_v31 }
  0x84   : > { %1620 = vmatpush.msra.mxu3 %v606_v15  ;;  %628 = vmatpush.msra.mxu2 %v597_v32 }
  0x86   : > { %485 = vmatmul.f32.gmra.mxu0 %v399_v62  ;;  %1621 = vmatpush.msra.mxu3 %v605_v18 }
  0x87   : > { %550 = vmatmul.f32.gmra.mxu1 %v400_v63  ;;  %574 = vmatmul.f32.gmra.mxu3 %v416_v0 }
  0x88   : > { %1622 = vmatpush.msra.mxu3 %v604_v19 }
  0x8a   : > { %1623 = vmatpush.msra.mxu3 %v603_v21 }
  0x8c   : > { %1624 = vmatpush.msra.mxu3 %v602_v22 }
  0x8e   : > { %488 = vmatmul.f32.gmra.mxu0 %v401_v2  ;;  %1625 = vmatpush.msra.mxu3 %v601_v25 }
  0x8f   : > { %553 = vmatmul.f32.gmra.mxu1 %v402_v3  ;;  %577 = vmatmul.f32.gmra.mxu3 %v418_v4 }
  0x90   : > { %1626 = vmatpush.msra.mxu3 %v600_v26  ;;  %v584_v26 = vld [vmem:[#allocation2 + $0x18] sm:$0xff] }
  0x92   : > { %1627 = vmatpush.msra.mxu3 %v599_v28 }
  0x94   : > { %1628 = vmatpush.msra.mxu3 %v598_v31 }
  0x96   : > { %491 = vmatmul.f32.gmra.mxu0 %v403_v9  ;;  %1629 = vmatpush.msra.mxu3 %v597_v32  ;;  %v593_v32 = vld [vmem:[#allocation2 + $0x60] sm:$0xff] }
  0x97   : > { %556 = vmatmul.f32.gmra.mxu1 %v404_v10 }
  0x9e   : > { %494 = vmatmul.f32.gmra.mxu0 %v405_v16 }
  0x9f   : > { %559 = vmatmul.f32.gmra.mxu1 %v406_v17  ;;  %v581_v17 = vld [vmem:[#allocation2 + $0x30] sm:$0xff] }
  0xa6   : > { %497 = vmatmul.f32.gmra.mxu0 %v407_v23  ;;  %v583_v23 = vld [vmem:[#allocation2 + $0x58] sm:$0xff] }
  0xa7   : > { %562 = vmatmul.f32.gmra.mxu1 %v408_v24 }
  0xae   : > { %500 = vmatmul.f32.gmra.mxu0 %v409_v29  ;;  %v585_v29 = vld [vmem:[#allocation2 + $0x50] sm:$0xff] }
  0xaf   : > { %565 = vmatmul.f32.gmra.mxu1 %v410_v30 }
  0xd3   : > { %v468_v33 = vpop.f32.mrf.mxu0 }
  0xd4   : > { %v533_v34 = vpop.f32.mrf.mxu1 }
  0xd5   : > { %v534_v35 = vadd.f32 %v533_v34, %v468_v33  ;;  %v586_v34 = vld [vmem:[#allocation2 + $0x68] sm:$0xff] }
  0xd7   : > { %629 = vmatmul.f32.vlgmr.msra.gmra.mxu2 %v534_v35 }
  0xda   : > { %v504_v36 = vpop.f32.mrf.mxu3 }
  0xdb   : > { %v471_v37 = vpop.f32.mrf.mxu0 }
  0xdc   : > { %v536_v38 = vpop.f32.mrf.mxu1 }
  0xdd   : > { %v537_v39 = vadd.f32 %v536_v38, %v471_v37  ;;  %v594_v38 = vld [vmem:[#allocation2 + $0x70] sm:$0xff] }
  0xdf   : > { %632 = vmatmul.f32.gmra.mxu2 %v537_v39 }
  0xe2   : > { %v507_v40 = vpop.f32.mrf.mxu3 }
  0xe3   : > { %v474_v41 = vpop.f32.mrf.mxu0 }
  0xe4   : > { %v539_v42 = vpop.f32.mrf.mxu1 }
  0xe5   : > { %v540_v43 = vadd.f32 %v539_v42, %v474_v41 }
  0xe7   : > { %635 = vmatmul.f32.gmra.mxu2 %v540_v43 }
  0xea   : > { %v510_v44 = vpop.f32.mrf.mxu3 }
  0xeb   : > { %v477_v45 = vpop.f32.mrf.mxu0 }
  0xec   : > { %v542_v46 = vpop.f32.mrf.mxu1 }
  0xed   : > { %v543_v47 = vadd.f32 %v542_v46, %v477_v45  ;;  %v588_v46 = vld [vmem:[#allocation2 + $0x48] sm:$0xff] }
  0xef   : > { %638 = vmatmul.f32.gmra.mxu2 %v543_v47 }
  0xf2   : > { %v513_v48 = vpop.f32.mrf.mxu3 }
  0xf3   : > { %v480_v49 = vpop.f32.mrf.mxu0 }
  0xf4   : > { %v545_v50 = vpop.f32.mrf.mxu1 }
  0xf5   : > { %v546_v51 = vadd.f32 %v545_v50, %v480_v49  ;;  %v596_v50 = vld [vmem:[#allocation2 + $0x28] sm:$0xff] }
  0xf7   : > { %641 = vmatmul.f32.gmra.mxu2 %v546_v51 }
  0xfa   : > { %v569_v52 = vpop.f32.mrf.mxu3 }
  0xfb   : > { %v570_v53 = vadd.f32 %v569_v52, %v504_v36  ;;  %v483_v54 = vpop.f32.mrf.mxu0  ;;  %v589_v52 = vld [vmem:[#allocation2 + $0x40] sm:$0xff] }
  0xfc   : > { %v548_v55 = vpop.f32.mrf.mxu1 }
  0xfd   : > { %v549_v56 = vadd.f32 %v548_v55, %v483_v54  ;;  %665 = vmatmul.f32.vlgmr.msra.gmra.mxu3 %v570_v53 }
  0xff   : > { %644 = vmatmul.f32.gmra.mxu2 %v549_v56  ;;  %v590_v56 = vld [vmem:[#allocation2 + $0x20] sm:$0xff] }
 0x102   : > { %v572_v57 = vpop.f32.mrf.mxu3 }
 0x103   : > { %v573_v58 = vadd.f32 %v572_v57, %v507_v40  ;;  %v486_v59 = vpop.f32.mrf.mxu0  ;;  %v587_v40 = vld [vmem:[#allocation2 + $0x8] sm:$0xff] }
 0x104   : > { %v551_v60 = vpop.f32.mrf.mxu1 }
 0x105   : > { %v552_v61 = vadd.f32 %v551_v60, %v486_v59  ;;  %668 = vmatmul.f32.gmra.mxu3 %v573_v58  ;;  %v591_v59 = vld [vmem:[#allocation2 + $0x10] sm:$0xff] }
 0x107   : > { %647 = vmatmul.f32.gmra.mxu2 %v552_v61 }
 0x10a   : > { %v575_v62 = vpop.f32.mrf.mxu3 }
 0x10b   : > { %v576_v63 = vadd.f32 %v575_v62, %v510_v44  ;;  %v489_v0 = vpop.f32.mrf.mxu0  ;;  %v595_v44 = vld [vmem:[#allocation2 + $0x78] sm:$0xff] }
 0x10c   : > { %v554_v1 = vpop.f32.mrf.mxu1  ;;  %v592_v62 = vld [vmem:[#allocation2 + $0x38] sm:$0xff] }
 0x10d   : > { %v555_v2 = vadd.f32 %v554_v1, %v489_v0  ;;  %671 = vmatmul.f32.gmra.mxu3 %v576_v63 }
 0x10f   : > { %650 = vmatmul.f32.gmra.mxu2 %v555_v2 }
 0x112   : > { %v578_v3 = vpop.f32.mrf.mxu3 }
 0x113   : > { %v579_v4 = vadd.f32 %v578_v3, %v513_v48  ;;  %v492_v5 = vpop.f32.mrf.mxu0 }
 0x114   : > { %v557_v6 = vpop.f32.mrf.mxu1 }
 0x115   : > { %v558_v7 = vadd.f32 %v557_v6, %v492_v5  ;;  %674 = vmatmul.f32.gmra.mxu3 %v579_v4 }
 0x117   : > { %653 = vmatmul.f32.gmra.mxu2 %v558_v7 }
 0x11b   : > { %v495_v8 = vpop.f32.mrf.mxu0 }
 0x11c   : > { %v560_v9 = vpop.f32.mrf.mxu1 }
 0x11d   : > { %v561_v10 = vadd.f32 %v560_v9, %v495_v8 }
 0x11f   : > { %656 = vmatmul.f32.gmra.mxu2 %v561_v10 }
 0x123   : > { %v498_v11 = vpop.f32.mrf.mxu0 }
 0x124   : > { %v563_v12 = vpop.f32.mrf.mxu1 }
 0x125   : > { %v564_v13 = vadd.f32 %v563_v12, %v498_v11 }
 0x127   : > { %659 = vmatmul.f32.gmra.mxu2 %v564_v13 }
 0x12b   : > { %v501_v14 = vpop.f32.mrf.mxu0 }
 0x12c   : > { %v566_v15 = vpop.f32.mrf.mxu1 }
 0x12d   : > { %v567_v16 = vadd.f32 %v566_v15, %v501_v14 }
 0x12f   : > { %662 = vmatmul.f32.gmra.mxu2 %v567_v16 }
 0x15a   : > { %v630_v18 = vpop.f32.mrf.mxu2 }
 0x15b   : > { %v678_v19 = vadd.f32 %v630_v18, %v581_v17 }
 0x15d   : > { %694 = vst [vmem:[#allocation2 + $0x30] sm:$0xff] %v678_v19 }
 0x162   : > { %v633_v21 = vpop.f32.mrf.mxu2 }
 0x163   : > { %v679_v22 = vadd.f32 %v633_v21, %v582_v20 }
 0x165   : > { %695 = vst [vmem:[#allocation2] sm:$0xff] %v679_v22 }
 0x16a   : > { %v636_v24 = vpop.f32.mrf.mxu2 }
 0x16b   : > { %v680_v25 = vadd.f32 %v636_v24, %v583_v23 }
 0x16d   : > { %696 = vst [vmem:[#allocation2 + $0x58] sm:$0xff] %v680_v25 }
 0x172   : > { %v639_v27 = vpop.f32.mrf.mxu2 }
 0x173   : > { %v681_v28 = vadd.f32 %v639_v27, %v584_v26 }
 0x175   : > { %697 = vst [vmem:[#allocation2 + $0x18] sm:$0xff] %v681_v28 }
 0x17a   : > { %v642_v30 = vpop.f32.mrf.mxu2 }
 0x17b   : > { %v682_v31 = vadd.f32 %v642_v30, %v585_v29 }
 0x17d   : > { %698 = vst [vmem:[#allocation2 + $0x50] sm:$0xff] %v682_v31 }
 0x180   : > { %v666_v33 = vpop.f32.mrf.mxu3 }
 0x181   : > { %v690_v35 = vadd.f32 %v666_v33, %v593_v32 }
 0x182   : > { %v645_v36 = vpop.f32.mrf.mxu2 }
 0x183   : > { %706 = vst [vmem:[#allocation2 + $0x60] sm:$0xff] %v690_v35  ;;  %v683_v37 = vadd.f32 %v645_v36, %v586_v34 }
 0x185   : > { %699 = vst [vmem:[#allocation2 + $0x68] sm:$0xff] %v683_v37 }
 0x188   : > { %v669_v39 = vpop.f32.mrf.mxu3 }
 0x189   : > { %v691_v41 = vadd.f32 %v669_v39, %v594_v38 }
 0x18a   : > { %v648_v42 = vpop.f32.mrf.mxu2 }
 0x18b   : > { %707 = vst [vmem:[#allocation2 + $0x70] sm:$0xff] %v691_v41  ;;  %v684_v43 = vadd.f32 %v648_v42, %v587_v40 }
 0x18d   : > { %700 = vst [vmem:[#allocation2 + $0x8] sm:$0xff] %v684_v43 }
 0x190   : > { %v672_v45 = vpop.f32.mrf.mxu3 }
 0x191   : > { %v692_v47 = vadd.f32 %v672_v45, %v595_v44 }
 0x192   : > { %v651_v48 = vpop.f32.mrf.mxu2 }
 0x193   : > { %708 = vst [vmem:[#allocation2 + $0x78] sm:$0xff] %v692_v47  ;;  %v685_v49 = vadd.f32 %v651_v48, %v588_v46 }
 0x195   : > { %701 = vst [vmem:[#allocation2 + $0x48] sm:$0xff] %v685_v49 }
 0x198   : > { %v675_v51 = vpop.f32.mrf.mxu3 }
 0x199   : > { %v693_v53 = vadd.f32 %v675_v51, %v596_v50 }
 0x19a   : > { %v654_v54 = vpop.f32.mrf.mxu2 }
 0x19b   : > { %709 = vst [vmem:[#allocation2 + $0x28] sm:$0xff] %v693_v53  ;;  %v686_v55 = vadd.f32 %v654_v54, %v589_v52 }
 0x19d   : > { %702 = vst [vmem:[#allocation2 + $0x40] sm:$0xff] %v686_v55 }
 0x1a2   : > { %v657_v57 = vpop.f32.mrf.mxu2 }
 0x1a3   : > { %v687_v58 = vadd.f32 %v657_v57, %v590_v56 }
 0x1a5   : > { %703 = vst [vmem:[#allocation2 + $0x20] sm:$0xff] %v687_v58 }
 0x1aa   : > { %v660_v60 = vpop.f32.mrf.mxu2 }
 0x1ab   : > { %v688_v61 = vadd.f32 %v660_v60, %v591_v59 }
 0x1ad   : > { %704 = vst [vmem:[#allocation2 + $0x10] sm:$0xff] %v688_v61 }
 0x1b1   : > { %713 = sbr.rel (%p1558_p1) target bundleno = 855 (0x357), region = 56 }
 0x1b2   : > { %v663_v63 = vpop.f32.mrf.mxu2 }
 0x1b3   : > { %v689_v0 = vadd.f32 %v663_v63, %v592_v62 }
 0x1b5   : > { %705 = vst [vmem:[#allocation2 + $0x38] sm:$0xff] %v689_v0 }
 0x1b6   : > { %v777_v1 = vld [vmem:[%s2829_s4 + $0x78] sm:$0xff]  ;;  %v776_v2 = vld [vmem:[%s2829_s4 + $0x70] sm:$0xff]  ;;  %v775_v3 = vld [vmem:[%s2829_s4 + $0x68] sm:$0xff] }
 0x1b7   : > { %778 = vmatpush.msra.mxu0 %v777_v1  ;;  %1630 = vmatpush.msra.mxu3 %v777_v1  ;;  %v774_v4 = vld [vmem:[%s2829_s4 + $0x60] sm:$0xff]  ;;  %v773_v5 = vld [vmem:[%s2829_s4 + $0x58] sm:$0xff]  ;;  %v772_v6 = vld [vmem:[%s2829_s4 + $0x50] sm:$0xff] }
 0x1b8   : > { %v771_v7 = vld [vmem:[%s2829_s4 + $0x48] sm:$0xff]  ;;  %v770_v8 = vld [vmem:[%s2829_s4 + $0x40] sm:$0xff]  ;;  %v769_v9 = vld [vmem:[%s2829_s4 + $0x38] sm:$0xff] }
 0x1b9   : > { %779 = vmatpush.msra.mxu0 %v776_v2  ;;  %1631 = vmatpush.msra.mxu3 %v776_v2  ;;  %v768_v10 = vld [vmem:[%s2829_s4 + $0x30] sm:$0xff]  ;;  %v767_v11 = vld [vmem:[%s2829_s4 + $0x28] sm:$0xff]  ;;  %v766_v12 = vld [vmem:[%s2829_s4 + $0x20] sm:$0xff] }
 0x1ba   : > { %v765_v13 = vld [vmem:[%s2829_s4 + $0x18] sm:$0xff]  ;;  %v764_v14 = vld [vmem:[%s2829_s4 + $0x10] sm:$0xff]  ;;  %v763_v15 = vld [vmem:[%s2829_s4 + $0x8] sm:$0xff] }
 0x1bb   : > { %780 = vmatpush.msra.mxu0 %v775_v3  ;;  %1632 = vmatpush.msra.mxu3 %v775_v3  ;;  %v762_v16 = vld [vmem:[%s2829_s4] sm:$0xff]  ;;  %v2329_v19 = vld [vmem:[%s2072_s15 + $0x8] sm:$0xff]  ;;  %v2337_v21 = vld [vmem:[%s2072_s15 + $0x10] sm:$0xff] }
 0x1bc   : > { %v2321_v17 = vld [vmem:[%s2072_s15] sm:$0xff]  ;;  %v2332_v20 = vld [vmem:[%s2072_s15 + $0x68] sm:$0xff]  ;;  %v2340_v22 = vld [vmem:[%s2072_s15 + $0x70] sm:$0xff] }
 0x1bd   : > { %781 = vmatpush.msra.mxu0 %v774_v4  ;;  %1633 = vmatpush.msra.mxu3 %v774_v4  ;;  %v2324_v18 = vld [vmem:[%s2072_s15 + $0x60] sm:$0xff]  ;;  %v2345_v23 = vld [vmem:[%s2072_s15 + $0x18] sm:$0xff]  ;;  %v2360_v27 = vld [vmem:[%s2072_s15 + $0x28] sm:$0xff] }
 0x1be   : > { %v2348_v24 = vld [vmem:[%s2072_s15 + $0x78] sm:$0xff]  ;;  %v2353_v25 = vld [vmem:[%s2072_s15 + $0x20] sm:$0xff]  ;;  %v889_v28 = vld [vmem:[%s2831_s6 + $0x70] sm:$0xff] }
 0x1bf   : > { %782 = vmatpush.msra.mxu0 %v773_v5  ;;  %1634 = vmatpush.msra.mxu3 %v773_v5  ;;  %v890_v26 = vld [vmem:[%s2831_s6 + $0x78] sm:$0xff]  ;;  %v888_v29 = vld [vmem:[%s2831_s6 + $0x68] sm:$0xff]  ;;  %v887_v30 = vld [vmem:[%s2831_s6 + $0x60] sm:$0xff] }
 0x1c0   : > { %891 = vmatpush.msra.mxu1 %v890_v26  ;;  %v886_v31 = vld [vmem:[%s2831_s6 + $0x58] sm:$0xff]  ;;  %v2376_v32 = vld [vmem:[%s2072_s15 + $0x30] sm:$0xff]  ;;  %v884_v34 = vld [vmem:[%s2831_s6 + $0x48] sm:$0xff] }
 0x1c1   : > { %783 = vmatpush.msra.mxu0 %v772_v6  ;;  %1635 = vmatpush.msra.mxu3 %v772_v6  ;;  %v885_v33 = vld [vmem:[%s2831_s6 + $0x50] sm:$0xff]  ;;  %v883_v35 = vld [vmem:[%s2831_s6 + $0x40] sm:$0xff]  ;;  %v882_v36 = vld [vmem:[%s2831_s6 + $0x38] sm:$0xff] }
 0x1c2   : > { %892 = vmatpush.msra.mxu1 %v889_v28  ;;  %v2392_v37 = vld [vmem:[%s2072_s15 + $0x38] sm:$0xff]  ;;  %v881_v38 = vld [vmem:[%s2831_s6 + $0x30] sm:$0xff]  ;;  %v880_v39 = vld [vmem:[%s2831_s6 + $0x28] sm:$0xff] }
 0x1c3   : > { %784 = vmatpush.msra.mxu0 %v771_v7  ;;  %1636 = vmatpush.msra.mxu3 %v771_v7  ;;  %v874_v40 = vld [vmem:[%s2830_s5 + $0x78] sm:$0xff]  ;;  %v879_v41 = vld [vmem:[%s2831_s6 + $0x20] sm:$0xff]  ;;  %v873_v42 = vld [vmem:[%s2830_s5 + $0x70] sm:$0xff] }
 0x1c4   : > { %893 = vmatpush.msra.mxu1 %v888_v29  ;;  %956 = vmatpush.msra.mxu2 %v874_v40  ;;  %v872_v43 = vld [vmem:[%s2830_s5 + $0x68] sm:$0xff]  ;;  %v878_v44 = vld [vmem:[%s2831_s6 + $0x18] sm:$0xff]  ;;  %v2417_v45 = vld [vmem:[%s2072_s15 + $0x40] sm:$0xff] }
 0x1c5   : > { %785 = vmatpush.msra.mxu0 %v770_v8  ;;  %1637 = vmatpush.msra.mxu3 %v770_v8  ;;  %v871_v46 = vld [vmem:[%s2830_s5 + $0x60] sm:$0xff]  ;;  %v877_v47 = vld [vmem:[%s2831_s6 + $0x10] sm:$0xff]  ;;  %v870_v48 = vld [vmem:[%s2830_s5 + $0x58] sm:$0xff] }
 0x1c6   : > { %894 = vmatpush.msra.mxu1 %v887_v30  ;;  %957 = vmatpush.msra.mxu2 %v873_v42  ;;  %v876_v49 = vld [vmem:[%s2831_s6 + $0x8] sm:$0xff]  ;;  %v869_v50 = vld [vmem:[%s2830_s5 + $0x50] sm:$0xff]  ;;  %v875_v51 = vld [vmem:[%s2831_s6] sm:$0xff] }
 0x1c7   : > { %786 = vmatpush.msra.mxu0 %v769_v9  ;;  %1638 = vmatpush.msra.mxu3 %v769_v9  ;;  %v868_v52 = vld [vmem:[%s2830_s5 + $0x48] sm:$0xff]  ;;  %v867_v54 = vld [vmem:[%s2830_s5 + $0x40] sm:$0xff]  ;;  %v866_v55 = vld [vmem:[%s2830_s5 + $0x38] sm:$0xff] }
 0x1c8   : > { %895 = vmatpush.msra.mxu1 %v886_v31  ;;  %958 = vmatpush.msra.mxu2 %v872_v43  ;;  %v2442_v53 = vld [vmem:[%s2072_s15 + $0x48] sm:$0xff]  ;;  %v865_v56 = vld [vmem:[%s2830_s5 + $0x30] sm:$0xff]  ;;  %v863_v59 = vld [vmem:[%s2830_s5 + $0x20] sm:$0xff] }
 0x1c9   : > { %787 = vmatpush.msra.mxu0 %v768_v10  ;;  %1639 = vmatpush.msra.mxu3 %v768_v10  ;;  %v864_v57 = vld [vmem:[%s2830_s5 + $0x28] sm:$0xff]  ;;  %v2460_v58 = vld [vmem:[%s2072_s15 + $0x50] sm:$0xff]  ;;  %v862_v60 = vld [vmem:[%s2830_s5 + $0x18] sm:$0xff] }
 0x1ca   : > { %896 = vmatpush.msra.mxu1 %v885_v33  ;;  %959 = vmatpush.msra.mxu2 %v871_v46  ;;  %v861_v61 = vld [vmem:[%s2830_s5 + $0x10] sm:$0xff]  ;;  %v2475_v62 = vld [vmem:[%s2072_s15 + $0x58] sm:$0xff]  ;;  %v860_v63 = vld [vmem:[%s2830_s5 + $0x8] sm:$0xff] }
 0x1cb   : > { %788 = vmatpush.msra.mxu0 %v767_v11  ;;  %1640 = vmatpush.msra.mxu3 %v767_v11  ;;  %v859_v0 = vld [vmem:[%s2830_s5] sm:$0xff]  ;;  %v730_v1 = vld [vmem:[#allocation2 + $0x30] sm:$0xff] }
 0x1cc   : > { %897 = vmatpush.msra.mxu1 %v884_v34  ;;  %960 = vmatpush.msra.mxu2 %v870_v48  ;;  %v746_v2 = vmul.f32 0.003921569, %v730_v1  ;;  %v742_v4 = vld [vmem:[#allocation2 + $0x60] sm:$0xff] }
 0x1cd   : > { %789 = vmatpush.msra.mxu0 %v766_v12  ;;  %1641 = vmatpush.msra.mxu3 %v766_v12  ;;  %v731_v6 = vld [vmem:[#allocation2] sm:$0xff]  ;;  %v758_v7 = vmul.f32 0.003921569, %v742_v4  ;;  %v743_v12 = vld [vmem:[#allocation2 + $0x70] sm:$0xff] }
 0x1ce   : > { %898 = vmatpush.msra.mxu1 %v883_v35  ;;  %961 = vmatpush.msra.mxu2 %v869_v50  ;;  %v747_v8 = vmul.f32 0.003921569, %v731_v6 }
 0x1cf   : > { %790 = vmatpush.msra.mxu0 %v765_v13  ;;  %1642 = vmatpush.msra.mxu3 %v765_v13 }
 0x1d0   : > { %899 = vmatpush.msra.mxu1 %v882_v36  ;;  %962 = vmatpush.msra.mxu2 %v868_v52 }
 0x1d1   : > { %791 = vmatpush.msra.mxu0 %v764_v14  ;;  %1643 = vmatpush.msra.mxu3 %v764_v14  ;;  %v732_v14 = vld [vmem:[#allocation2 + $0x58] sm:$0xff] }
 0x1d2   : > { %900 = vmatpush.msra.mxu1 %v881_v38  ;;  %963 = vmatpush.msra.mxu2 %v867_v54 }
 0x1d3   : > { %792 = vmatpush.msra.mxu0 %v763_v15  ;;  %1644 = vmatpush.msra.mxu3 %v763_v15  ;;  %v759_v15 = vmul.f32 0.003921569, %v743_v12 }
 0x1d4   : > { %901 = vmatpush.msra.mxu1 %v880_v39  ;;  %964 = vmatpush.msra.mxu2 %v866_v55 }
 0x1d5   : > { %793 = vmatpush.msra.mxu0 %v762_v16  ;;  %1645 = vmatpush.msra.mxu3 %v762_v16  ;;  %v748_v16 = vmul.f32 0.003921569, %v732_v14 }
 0x1d6   : > { %794 = vmatmul.f32.vlgmr.msra.gmra.mxu0 %v2321_v17  ;;  %830 = vmatmul.f32.vlgmr.msra.gmra.mxu3 %v2324_v18 }
 0x1d7   : > { %1646 = vmatpush.msrb.mxu3 %v890_v26  ;;  %902 = vmatpush.msra.mxu1 %v879_v41 }
 0x1d8   : > { %965 = vmatpush.msra.mxu2 %v865_v56 }
 0x1d9   : > { %1647 = vmatpush.msrb.mxu3 %v889_v28  ;;  %903 = vmatpush.msra.mxu1 %v878_v44 }
 0x1da   : > { %966 = vmatpush.msra.mxu2 %v864_v57 }
 0x1db   : > { %1648 = vmatpush.msrb.mxu3 %v888_v29  ;;  %904 = vmatpush.msra.mxu1 %v877_v47  ;;  %v744_v29 = vld [vmem:[#allocation2 + $0x78] sm:$0xff] }
 0x1dc   : > { %967 = vmatpush.msra.mxu2 %v863_v59 }
 0x1dd   : > { %1649 = vmatpush.msrb.mxu3 %v887_v30  ;;  %905 = vmatpush.msra.mxu1 %v876_v49 }
 0x1de   : > { %797 = vmatmul.f32.gmra.mxu0 %v2329_v19  ;;  %833 = vmatmul.f32.gmra.mxu3 %v2332_v20 }
 0x1df   : > { %1650 = vmatpush.msrb.mxu3 %v886_v31  ;;  %906 = vmatpush.msra.mxu1 %v875_v51  ;;  %v733_v31 = vld [vmem:[#allocation2 + $0x18] sm:$0xff] }
 0x1e0   : > { %907 = vmatmul.f32.vlgmr.msra.gmra.mxu1 %v2321_v17  ;;  %968 = vmatpush.msra.mxu2 %v862_v60 }
 0x1e1   : > { %1651 = vmatpush.msrb.mxu3 %v885_v33  ;;  %v749_v33 = vmul.f32 0.003921569, %v733_v31 }
 0x1e2   : > { %969 = vmatpush.msra.mxu2 %v861_v61 }
 0x1e3   : > { %1652 = vmatpush.msrb.mxu3 %v884_v34 }
 0x1e4   : > { %970 = vmatpush.msra.mxu2 %v860_v63 }
 0x1e5   : > { %1653 = vmatpush.msrb.mxu3 %v883_v35 }
 0x1e6   : > { %800 = vmatmul.f32.gmra.mxu0 %v2337_v21  ;;  %836 = vmatmul.f32.gmra.mxu3 %v2340_v22 }
 0x1e7   : > { %1654 = vmatpush.msrb.mxu3 %v882_v36  ;;  %971 = vmatpush.msra.mxu2 %v859_v0 }
 0x1e8   : > { %910 = vmatmul.f32.gmra.mxu1 %v2329_v19 }
 0x1e9   : > { %1655 = vmatpush.msrb.mxu3 %v881_v38 }
 0x1eb   : > { %1656 = vmatpush.msrb.mxu3 %v880_v39  ;;  %v734_v39 = vld [vmem:[#allocation2 + $0x50] sm:$0xff] }
 0x1ed   : > { %1657 = vmatpush.msrb.mxu3 %v879_v41  ;;  %v750_v41 = vmul.f32 0.003921569, %v734_v39 }
 0x1ee   : > { %803 = vmatmul.f32.gmra.mxu0 %v2345_v23  ;;  %839 = vmatmul.f32.gmra.mxu3 %v2348_v24 }
 0x1ef   : > { %1658 = vmatpush.msrb.mxu3 %v878_v44 }
 0x1f0   : > { %913 = vmatmul.f32.gmra.mxu1 %v2337_v21 }
 0x1f1   : > { %1659 = vmatpush.msrb.mxu3 %v877_v47 }
 0x1f3   : > { %1660 = vmatpush.msrb.mxu3 %v876_v49 }
 0x1f5   : > { %1661 = vmatpush.msrb.mxu3 %v875_v51 }
 0x1f6   : > { %806 = vmatmul.f32.gmra.mxu0 %v2353_v25  ;;  %943 = vmatmul.f32.vlgmr.msrb.gmra.mxu3 %v2324_v18 }
 0x1f7   : > { %1662 = vmatpush.msra.mxu3 %v874_v40 }
 0x1f8   : > { %916 = vmatmul.f32.gmra.mxu1 %v2345_v23 }
 0x1f9   : > { %1663 = vmatpush.msra.mxu3 %v873_v42 }
 0x1fb   : > { %1664 = vmatpush.msra.mxu3 %v872_v43 }
 0x1fd   : > { %1665 = vmatpush.msra.mxu3 %v871_v46  ;;  %v735_v46 = vld [vmem:[#allocation2 + $0x68] sm:$0xff] }
 0x1fe   : > { %809 = vmatmul.f32.gmra.mxu0 %v2360_v27  ;;  %946 = vmatmul.f32.gmra.mxu3 %v2332_v20  ;;  %v751_v47 = vmul.f32 0.003921569, %v735_v46 }
 0x1ff   : > { %1666 = vmatpush.msra.mxu3 %v870_v48 }
 0x200   : > { %919 = vmatmul.f32.gmra.mxu1 %v2353_v25 }
 0x201   : > { %1667 = vmatpush.msra.mxu3 %v869_v50  ;;  %v736_v50 = vld [vmem:[#allocation2 + $0x8] sm:$0xff] }
 0x202   : > { %v752_v51 = vmul.f32 0.003921569, %v736_v50 }
 0x203   : > { %1668 = vmatpush.msra.mxu3 %v868_v52 }
 0x205   : > { %1669 = vmatpush.msra.mxu3 %v867_v54  ;;  %v737_v54 = vld [vmem:[#allocation2 + $0x48] sm:$0xff] }
 0x206   : > { %812 = vmatmul.f32.gmra.mxu0 %v2376_v32  ;;  %949 = vmatmul.f32.gmra.mxu3 %v2340_v22 }
 0x207   : > { %1670 = vmatpush.msra.mxu3 %v866_v55  ;;  %v753_v55 = vmul.f32 0.003921569, %v737_v54 }
 0x208   : > { %922 = vmatmul.f32.gmra.mxu1 %v2360_v27 }
 0x209   : > { %1671 = vmatpush.msra.mxu3 %v865_v56 }
 0x20b   : > { %1672 = vmatpush.msra.mxu3 %v864_v57 }
 0x20d   : > { %1673 = vmatpush.msra.mxu3 %v863_v59 }
 0x20e   : > { %815 = vmatmul.f32.gmra.mxu0 %v2392_v37  ;;  %952 = vmatmul.f32.gmra.mxu3 %v2348_v24 }
 0x20f   : > { %1674 = vmatpush.msra.mxu3 %v862_v60 }
 0x210   : > { %925 = vmatmul.f32.gmra.mxu1 %v2376_v32  ;;  %v760_v32 = vmul.f32 0.003921569, %v744_v29 }
 0x211   : > { %1675 = vmatpush.msra.mxu3 %v861_v61 }
 0x213   : > { %1676 = vmatpush.msra.mxu3 %v860_v63 }
 0x215   : > { %1677 = vmatpush.msra.mxu3 %v859_v0 }
 0x216   : > { %818 = vmatmul.f32.gmra.mxu0 %v2417_v45 }
 0x218   : > { %928 = vmatmul.f32.gmra.mxu1 %v2392_v37  ;;  %v745_v37 = vld [vmem:[#allocation2 + $0x28] sm:$0xff] }
 0x219   : > { %v761_v40 = vmul.f32 0.003921569, %v745_v37 }
 0x21e   : > { %821 = vmatmul.f32.gmra.mxu0 %v2442_v53 }
 0x220   : > { %931 = vmatmul.f32.gmra.mxu1 %v2417_v45 }
 0x226   : > { %824 = vmatmul.f32.gmra.mxu0 %v2460_v58 }
 0x228   : > { %934 = vmatmul.f32.gmra.mxu1 %v2442_v53 }
 0x22e   : > { %827 = vmatmul.f32.gmra.mxu0 %v2475_v62 }
 0x230   : > { %937 = vmatmul.f32.gmra.mxu1 %v2460_v58  ;;  %v738_v58 = vld [vmem:[#allocation2 + $0x40] sm:$0xff] }
 0x231   : > { %v754_v59 = vmul.f32 0.003921569, %v738_v58 }
 0x238   : > { %940 = vmatmul.f32.gmra.mxu1 %v2475_v62  ;;  %v739_v62 = vld [vmem:[#allocation2 + $0x20] sm:$0xff] }
 0x239   : > { %v755_v63 = vmul.f32 0.003921569, %v739_v62 }
 0x253   : > { %v795_v3 = vpop.f32.mrf.mxu0 }
 0x254   : > { %v2491_v5 = vadd.f32 %v795_v3, %v746_v2  ;;  %v740_v2 = vld [vmem:[#allocation2 + $0x10] sm:$0xff] }
 0x255   : > { %v756_v3 = vmul.f32 0.003921569, %v740_v2 }
 0x256   : > { %972 = vmatmul.f32.vlgmr.msra.gmra.mxu2 %v2491_v5 }
 0x259   : > { %v831_v9 = vpop.f32.mrf.mxu3 }
 0x25a   : > { %v2495_v10 = vadd.f32 %v831_v9, %v758_v7  ;;  %v741_v7 = vld [vmem:[#allocation2 + $0x38] sm:$0xff] }
 0x25b   : > { %v798_v11 = vpop.f32.mrf.mxu0 }
 0x25c   : > { %v2497_v13 = vadd.f32 %v798_v11, %v747_v8  ;;  %1008 = vmatmul.f32.vlgmr.msra.gmra.mxu3 %v2495_v10  ;;  %v757_v8 = vmul.f32 0.003921569, %v741_v7 }
 0x25e   : > { %975 = vmatmul.f32.gmra.mxu2 %v2497_v13 }
 0x261   : > { %v834_v26 = vpop.f32.mrf.mxu3 }
 0x262   : > { %v2502_v27 = vadd.f32 %v834_v26, %v759_v15  ;;  %v908_v15 = vpop.f32.mrf.mxu1 }
 0x263   : > { %v801_v28 = vpop.f32.mrf.mxu0 }
 0x264   : > { %v2504_v30 = vadd.f32 %v801_v28, %v748_v16  ;;  %1011 = vmatmul.f32.gmra.mxu3 %v2502_v27 }
 0x266   : > { %978 = vmatmul.f32.gmra.mxu2 %v2504_v30 }
 0x269   : > { %v837_v34 = vpop.f32.mrf.mxu3 }
 0x26a   : > { %v2509_v35 = vadd.f32 %v837_v34, %v760_v32  ;;  %v911_v26 = vpop.f32.mrf.mxu1 }
 0x26b   : > { %v804_v36 = vpop.f32.mrf.mxu0 }
 0x26c   : > { %v2511_v38 = vadd.f32 %v804_v36, %v749_v33  ;;  %1014 = vmatmul.f32.gmra.mxu3 %v2509_v35 }
 0x26e   : > { %981 = vmatmul.f32.gmra.mxu2 %v2511_v38 }
 0x271   : > { %v840_v42 = vpop.f32.mrf.mxu3 }
 0x272   : > { %v2516_v43 = vadd.f32 %v840_v42, %v761_v40  ;;  %v914_v29 = vpop.f32.mrf.mxu1 }
 0x273   : > { %v807_v44 = vpop.f32.mrf.mxu0 }
 0x274   : > { %v2518_v45 = vadd.f32 %v807_v44, %v750_v41  ;;  %1017 = vmatmul.f32.gmra.mxu3 %v2516_v43 }
 0x276   : > { %984 = vmatmul.f32.gmra.mxu2 %v2518_v45 }
 0x279   : > { %v944_v12 = vpop.f32.mrf.mxu3 }
 0x27a   : > { %v917_v36 = vpop.f32.mrf.mxu1 }
 0x27b   : > { %v810_v48 = vpop.f32.mrf.mxu0 }
 0x27c   : > { %v2523_v49 = vadd.f32 %v810_v48, %v751_v47 }
 0x27e   : > { %987 = vmatmul.f32.gmra.mxu2 %v2523_v49 }
 0x281   : > { %v947_v14 = vpop.f32.mrf.mxu3 }
 0x283   : > { %v813_v52 = vpop.f32.mrf.mxu0 }
 0x284   : > { %v2526_v53 = vadd.f32 %v813_v52, %v752_v51  ;;  %v2549_v51 = vpop.f32.mrf.mxu1 }
 0x286   : > { %990 = vmatmul.f32.gmra.mxu2 %v2526_v53 }
 0x289   : > { %v950_v16 = vpop.f32.mrf.mxu3 }
 0x28b   : > { %v816_v56 = vpop.f32.mrf.mxu0 }
 0x28c   : > { %v2529_v57 = vadd.f32 %v816_v56, %v753_v55 }
 0x28e   : > { %993 = vmatmul.f32.gmra.mxu2 %v2529_v57 }
 0x291   : > { %v2544_v28 = vpop.f32.mrf.mxu3 }
 0x293   : > { %v819_v60 = vpop.f32.mrf.mxu0 }
 0x294   : > { %v2532_v61 = vadd.f32 %v819_v60, %v754_v59 }
 0x296   : > { %996 = vmatmul.f32.gmra.mxu2 %v2532_v61 }
 0x29b   : > { %v822_v0 = vpop.f32.mrf.mxu0 }
 0x29c   : > { %v2535_v1 = vadd.f32 %v822_v0, %v755_v63 }
 0x29e   : > { %999 = vmatmul.f32.gmra.mxu2 %v2535_v1 }
 0x2a3   : > { %v825_v4 = vpop.f32.mrf.mxu0 }
 0x2a4   : > { %v2538_v6 = vadd.f32 %v825_v4, %v756_v3 }
 0x2a6   : > { %1002 = vmatmul.f32.gmra.mxu2 %v2538_v6 }
 0x2ab   : > { %v828_v9 = vpop.f32.mrf.mxu0 }
 0x2ac   : > { %v2541_v11 = vadd.f32 %v828_v9, %v757_v8 }
 0x2ae   : > { %1005 = vmatmul.f32.gmra.mxu2 %v2541_v11 }
 0x2d9   : > { %v973_v31 = vpop.f32.mrf.mxu2 }
 0x2da   : > { %v974_v32 = vadd.f32 %v973_v31, %v908_v15 }
 0x2dc   : > { %v1559_v33 = vmul.f32 -1.442695, %v974_v32 }
 0x2de   : > { %1752 = vpow2.f32 %v1559_v33 }
 0x2df   : > { %v1009_v34 = vpop.f32.mrf.mxu3 }
 0x2e0   : > { %v1010_v37 = vadd.f32 %v1009_v34, %v944_v12 }
 0x2e1   : > { %v976_v39 = vpop.f32.mrf.mxu2 }
 0x2e2   : > { %v1571_v40 = vmul.f32 -1.442695, %v1010_v37  ;;  %v977_v41 = vadd.f32 %v976_v39, %v911_v26  ;;  %v2577_v39 = vpop.f32.mrf.mxu1 }
 0x2e4   : > { %v1753_v42 = vpop.eup %1752  ;;  %1754 = vpow2.f32 %v1571_v40  ;;  %v1560_v44 = vmul.f32 -1.442695, %v977_v41 }
 0x2e5   : > { %1756 = vtanh.f32 %v2491_v5  ;;  %v1069_v46 = vadd.f32 1.0, %v1753_v42 }
 0x2e6   : > { %1758 = vpow2.f32 %v1560_v44 }
 0x2e7   : > { %1760 = vrcp.f32 %v1069_v46  ;;  %v1012_v47 = vpop.f32.mrf.mxu3  ;;  %v1094_v60 = vand.u32 2147483647, %v1069_v46  ;;  %v1096_v62 = vand.u32 2147483648, %v1069_v46  ;;  %vm1090_vm0 = vweird.f32 %v1069_v46 }
 0x2e8   : > { %1762 = vtanh.f32 %v2495_v10  ;;  %v1013_v48 = vadd.f32 %v1012_v47, %v947_v14 }
 0x2e9   : > { %1764 = vtanh.f32 %v2497_v13  ;;  %v979_v50 = vpop.f32.mrf.mxu2  ;;  %vm2567_vm1 = vcmp.eq.f32.partialorder %v1094_v60, 8.507059e+37  ;;  %v1097_v12 = vor.u32 1.1754944e-38, %v1096_v62 }
 0x2ea   : > { %v1755_v52 = vpop.eup %1754  ;;  %1766 = vtanh.f32 %v2502_v27  ;;  %v1572_v54 = vmul.f32 -1.442695, %v1013_v48  ;;  %v980_v55 = vadd.f32 %v979_v50, %v914_v29 }
 0x2eb   : > { %v2552_v56 = vpop.eup %1756  ;;  %1768 = vtanh.f32 %v2504_v30  ;;  %v1081_v5 = vadd.f32 1.0, %v1755_v52 }
 0x2ec   : > { %v1759_v58 = vpop.eup %1758  ;;  %1770 = vpow2.f32 %v1572_v54  ;;  %v1561_v59 = vmul.f32 -1.442695, %v980_v55 }
 0x2ed   : > { %v1761_v10 = vpop.eup %1760  ;;  %1772 = vrcp.f32 %v1081_v5  ;;  %v2557_v0 = vadd.f32 1.0, %v1759_v58  ;;  %v1274_v2 = vand.u32 2147483647, %v1081_v5  ;;  %v1276_v30 = vand.u32 2147483648, %v1081_v5 }
 0x2ee   : > { %v2555_v13 = vpop.eup %1762  ;;  %v1086_v63 = vmul.f32 %v1761_v10, %v1069_v46  ;;  %1774 = vpow2.f32 %v1561_v59  ;;  %vm1091_vm2 = vweird.f32 %v1761_v10  ;;  %vm1270_vm3 = vweird.f32 %v1081_v5 }
 0x2ef   : > { %v2559_v27 = vpop.eup %1764  ;;  %1776 = vtanh.f32 %v2509_v35  ;;  %v1015_v3 = vpop.f32.mrf.mxu3  ;;  %vm2571_vm4 = vcmp.eq.f32.partialorder %v1274_v2, 8.507059e+37  ;;  %v1277_v33 = vor.u32 1.1754944e-38, %v1276_v30  ;;  %v1109_v42 = vand.u32 2147483647, %v2557_v0  ;;  %vm1092_vm5 = vmor %vm1090_vm0, %vm1091_vm2 }
 0x2f0   : > { %v2562_v4 = vpop.eup %1766  ;;  %v1087_v7 = vsub.f32 1.0, %v1086_v63  ;;  %1778 = vrcp.f32 %v2557_v0  ;;  %v1016_v14 = vadd.f32 %v1015_v3, %v950_v16  ;;  %v1111_v44 = vand.u32 2147483648, %v2557_v0 }
 0x2f1   : > { %v2565_v8 = vpop.eup %1768  ;;  %v982_v15 = vpop.f32.mrf.mxu2  ;;  %vm1105_vm7 = vweird.f32 %v2557_v0  ;;  %vm2594_vm8 = vcmp.eq.f32.partialorder %v1109_v42, 8.507059e+37 }
 0x2f2   : > { %v1771_v26 = vpop.eup %1770  ;;  %v1088_v35 = vmul.f32 %v1761_v10, %v1087_v7  ;;  %v983_v29 = vadd.f32 %v982_v15, %v917_v36  ;;  %v1573_v37 = vmul.f32 -1.442695, %v1016_v14 }
 0x2f3   : > { %v1773_v31 = vpop.eup %1772  ;;  %v2575_v34 = vadd.f32 1.0, %v1771_v26 }
 0x2f4   : > { %v1775_v40 = vpop.eup %1774  ;;  %v1089_v41 = vadd.f32 %v1761_v10, %v1088_v35  ;;  %v1266_v16 = vmul.f32 %v1773_v31, %v1081_v5  ;;  %vm1271_vm6 = vweird.f32 %v1773_v31  ;;  %v1562_v36 = vmul.f32 -1.442695, %v983_v29 }
 0x2f5   : > { %v2581_v47 = vpop.eup %1776  ;;  %1780 = vrcp.f32 %v2575_v34  ;;  %v2587_v54 = vadd.f32 1.0, %v1775_v40  ;;  %v1289_v46 = vand.u32 2147483647, %v2575_v34  ;;  %v1291_v59 = vand.u32 2147483648, %v2575_v34  ;;  %vm2600_vm9 = vmor %vm1270_vm3, %vm1271_vm6 }
 0x2f6   : > { %v1779_v48 = vpop.eup %1778  ;;  %v1093_v50 = vsel %vm1092_vm5, %v1761_v10, %v1089_v41  ;;  %v1267_v52 = vsub.f32 1.0, %v1266_v16  ;;  %1782 = vpow2.f32 %v1573_v37  ;;  %v1112_v10 = vor.u32 1.1754944e-38, %v1111_v44 }
 0x2f7   : > { %v1098_v55 = vsel %vm2567_vm1, %v1097_v12, %v1093_v50  ;;  %v1101_v58 = vmul.f32 %v1779_v48, %v2557_v0  ;;  %v1018_v2 = vpop.f32.mrf.mxu3  ;;  %vm1106_vm10 = vweird.f32 %v1779_v48  ;;  %vm1285_vm11 = vweird.f32 %v2575_v34  ;;  %v2622_v50 = vpop.f32.mrf.mxu1 }
 0x2f8   : > { %v1357_v60 = vsub.f32 1.0, %v1098_v55  ;;  %v1268_v62 = vmul.f32 %v1773_v31, %v1267_v52  ;;  %1784 = vrcp.f32 %v2587_v54  ;;  %v1341_v9 = vmul.f32 %v2552_v56, %v1098_v55  ;;  %vm1107_vm13 = vmor %vm1105_vm7, %vm1106_vm10 }
 0x2f9   : > { %v1102_v3 = vsub.f32 1.0, %v1101_v58  ;;  %v985_v7 = vpop.f32.mrf.mxu2  ;;  %1786 = vpow2.f32 %v1562_v36  ;;  %vm2608_vm12 = vcmp.eq.f32.partialorder %v1289_v46, 8.507059e+37  ;;  %v1292_v35 = vor.u32 1.1754944e-38, %v1291_v59 }
 0x2fa   : > { %v1373_v12 = vmul.f32 %v1357_v60, %v2321_v17  ;;  %v1269_v14 = vadd.f32 %v1773_v31, %v1268_v62  ;;  %v1019_v29 = vadd.f32 %v1018_v2, %v2544_v28  ;;  %v1124_v17 = vand.u32 2147483647, %v2587_v54 }
 0x2fb   : > { %v1781_v15 = vpop.eup %1780  ;;  %v1103_v5 = vmul.f32 %v1779_v48, %v1102_v3  ;;  %v1126_v44 = vand.u32 2147483648, %v2587_v54  ;;  %v986_v52 = vadd.f32 %v985_v7, %v2549_v51  ;;  %vm1120_vm0 = vweird.f32 %v2587_v54 }
 0x2fc   : > { %v1783_v37 = vpop.eup %1782  ;;  %v1389_v40 = vadd.f32 %v1373_v12, %v1341_v9  ;;  %v1273_v41 = vsel %vm2600_vm9, %v1773_v31, %v1269_v14  ;;  %v1281_v56 = vmul.f32 %v1781_v15, %v2575_v34  ;;  %vm1286_vm14 = vweird.f32 %v1781_v15 }
 0x2fd   : > { %v1278_v16 = vsel %vm2571_vm4, %v1277_v33, %v1273_v41  ;;  %v1104_v42 = vadd.f32 %v1779_v48, %v1103_v5  ;;  %v2620_v36 = vadd.f32 1.0, %v1783_v37  ;;  %v1574_v58 = vmul.f32 -1.442695, %v1019_v29  ;;  %vm2637_vm15 = vmor %vm1285_vm11, %vm1286_vm14 }
 0x2fe   : > { %1405 = vst [vmem:[%s2084_s19] sm:$0xff] %v1389_v40  ;;  %v1369_v28 = vsub.f32 1.0, %v1278_v16  ;;  %v1282_v31 = vsub.f32 1.0, %v1281_v56  ;;  %v1785_v55 = vpop.eup %1784  ;;  %v1353_v32 = vmul.f32 %v2555_v13, %v1278_v16  ;;  %vm2642_vm1 = vcmp.eq.f32.partialorder %v1124_v17, 8.507059e+37 }
 0x2ff   : > { %v1108_v33 = vsel %vm1107_vm13, %v1779_v48, %v1104_v42  ;;  %1788 = vrcp.f32 %v2620_v36  ;;  %v1787_v46 = vpop.eup %1786  ;;  %v1116_v0 = vmul.f32 %v1785_v55, %v2587_v54  ;;  %v1563_v9 = vmul.f32 -1.442695, %v986_v52  ;;  %v929_v26 = vpop.f32.mrf.mxu1 }
 0x300   : > { %v1385_v59 = vmul.f32 %v1369_v28, %v2324_v18  ;;  %v1113_v60 = vsel %vm2594_vm8, %v1112_v10, %v1108_v33  ;;  %v1283_v62 = vmul.f32 %v1781_v15, %v1282_v31  ;;  %v1127_v18 = vor.u32 1.1754944e-38, %v1126_v44 }
 0x301   : > { %v1358_v2 = vsub.f32 1.0, %v1113_v60  ;;  %v988_v48 = vpop.f32.mrf.mxu2  ;;  %v1342_v10 = vmul.f32 %v2559_v27, %v1113_v60  ;;  %v1117_v3 = vsub.f32 1.0, %v1116_v0  ;;  %v2648_v34 = vadd.f32 1.0, %v1787_v46 }
 0x302   : > { %v1401_v63 = vadd.f32 %v1385_v59, %v1353_v32  ;;  %v1284_v30 = vadd.f32 %v1781_v15, %v1283_v62  ;;  %1790 = vpow2.f32 %v1574_v58  ;;  %vm1121_vm2 = vweird.f32 %v1785_v55 }
 0x303   : > { %v1374_v7 = vmul.f32 %v1358_v2, %v2329_v19  ;;  %v1118_v14 = vmul.f32 %v1785_v55, %v1117_v3  ;;  %v989_v5 = vadd.f32 %v988_v48, %v2577_v39  ;;  %vm1300_vm3 = vweird.f32 %v2620_v36  ;;  %vm1122_vm4 = vmor %vm1120_vm0, %vm1121_vm2 }
 0x304   : > { %1417 = vst [vmem:[%s2084_s19 + $0x60] sm:$0xff] %v1401_v63  ;;  %v1288_v12 = vsel %vm2637_vm15, %v1781_v15, %v1284_v30  ;;  %1792 = vrcp.f32 %v2648_v34  ;;  %v1304_v56 = vand.u32 2147483647, %v2620_v36  ;;  %v1306_v39 = vand.u32 2147483648, %v2620_v36 }
 0x305   : > { %v1789_v29 = vpop.eup %1788  ;;  %v1390_v37 = vadd.f32 %v1374_v7, %v1342_v10  ;;  %v1293_v27 = vsel %vm2608_vm12, %v1292_v35, %v1288_v12  ;;  %v1119_v40 = vadd.f32 %v1785_v55, %v1118_v14  ;;  %1794 = vpow2.f32 %v1563_v9 }
 0x306   : > { %v1370_v19 = vsub.f32 1.0, %v1293_v27  ;;  %v1296_v41 = vmul.f32 %v1789_v29, %v2620_v36  ;;  %v1354_v15 = vmul.f32 %v2562_v4, %v1293_v27  ;;  %vm1301_vm5 = vweird.f32 %v1789_v29 }
 0x307   : > { %1406 = vst [vmem:[%s2084_s19 + $0x8] sm:$0xff] %v1390_v37  ;;  %v1123_v17 = vsel %vm1122_vm4, %v1785_v55, %v1119_v40  ;;  %v1564_v42 = vmul.f32 -1.442695, %v989_v5  ;;  %1796 = vtanh.f32 %v2511_v38  ;;  %vm2669_vm6 = vcmp.eq.f32.partialorder %v1304_v56, 8.507059e+37  ;;  %vm2676_vm7 = vmor %vm1300_vm3, %vm1301_vm5  ;;  %v932_v7 = vpop.f32.mrf.mxu1 }
 0x308   : > { %v1386_v35 = vmul.f32 %v1370_v19, %v2332_v20  ;;  %v1297_v16 = vsub.f32 1.0, %v1296_v41  ;;  %v1791_v44 = vpop.eup %1790  ;;  %v1128_v4 = vsel %vm2642_vm1, %v1127_v18, %v1123_v17  ;;  %v1307_v38 = vor.u32 1.1754944e-38, %v1306_v39 }
 0x309   : > { %v991_v28 = vpop.f32.mrf.mxu2  ;;  %v1359_v31 = vsub.f32 1.0, %v1128_v4  ;;  %v1084_v55 = vadd.f32 1.0, %v1791_v44  ;;  %1798 = vpow2.f32 %v1564_v42  ;;  %v1343_v46 = vmul.f32 %v2565_v8, %v1128_v4 }
 0x30a   : > { %v1402_v54 = vadd.f32 %v1386_v35, %v1354_v15  ;;  %v1298_v52 = vmul.f32 %v1789_v29, %v1297_v16  ;;  %v1793_v33 = vpop.eup %1792  ;;  %v992_v58 = vadd.f32 %v991_v28, %v2622_v50  ;;  %v1139_v8 = vand.u32 2147483647, %v2648_v34 }
 0x30b   : > { %v1375_v59 = vmul.f32 %v1359_v31, %v2337_v21  ;;  %v1131_v62 = vmul.f32 %v1793_v33, %v2648_v34  ;;  %v1795_v0 = vpop.eup %1794  ;;  %1800 = vrcp.f32 %v1084_v55  ;;  %v1141_v21 = vand.u32 2147483648, %v2648_v34 }
 0x30c   : > { %1418 = vst [vmem:[%s2084_s19 + $0x68] sm:$0xff] %v1402_v54  ;;  %v1299_v60 = vadd.f32 %v1789_v29, %v1298_v52  ;;  %v2687_v13 = vadd.f32 1.0, %v1795_v0  ;;  %v1565_v48 = vmul.f32 -1.442695, %v992_v58  ;;  %vm1136_vm8 = vweird.f32 %v1793_v33 }
 0x30d   : > { %v1391_v36 = vadd.f32 %v1375_v59, %v1343_v46  ;;  %v1132_v51 = vsub.f32 1.0, %v1131_v62  ;;  %v1797_v18 = vpop.eup %1796  ;;  %vm1135_vm9 = vweird.f32 %v2648_v34  ;;  %v1142_v37 = vor.u32 1.1754944e-38, %v1141_v21 }
 0x30e   : > { %v1303_v2 = vsel %vm2676_vm7, %v1789_v29, %v1299_v60  ;;  %1802 = vrcp.f32 %v2687_v13  ;;  %vm1137_vm10 = vmor %vm1135_vm9, %vm1136_vm8  ;;  %v1319_v27 = vand.u32 2147483647, %v1084_v55  ;;  %vm1140_vm11 = vcmp.eq.f32.partialorder %v1139_v8, 8.507059e+37 }
 0x30f   : > { %v1308_v50 = vsel %vm2669_vm6, %v1307_v38, %v1303_v2  ;;  %1407 = vst [vmem:[%s2084_s19 + $0x10] sm:$0xff] %v1391_v36  ;;  %v1133_v10 = vmul.f32 %v1793_v33, %v1132_v51  ;;  %v1799_v30 = vpop.eup %1798  ;;  %1804 = vpow2.f32 %v1565_v48  ;;  %v1321_v15 = vand.u32 2147483648, %v1084_v55  ;;  %v935_v46 = vpop.f32.mrf.mxu1 }
 0x310   : > { %v1371_v63 = vsub.f32 1.0, %v1308_v50  ;;  %v1355_v9 = vmul.f32 %v2581_v47, %v1308_v50  ;;  %v2698_v5 = vadd.f32 1.0, %v1799_v30  ;;  %vm1315_vm12 = vweird.f32 %v1084_v55 }
 0x311   : > { %v994_v3 = vpop.f32.mrf.mxu2  ;;  %v1134_v14 = vadd.f32 %v1793_v33, %v1133_v10  ;;  %v1801_v29 = vpop.eup %1800  ;;  %vm2703_vm14 = vcmp.eq.f32.partialorder %v1319_v27, 8.507059e+37  ;;  %v1322_v31 = vor.u32 1.1754944e-38, %v1321_v15  ;;  %v1154_v52 = vand.u32 2147483647, %v2687_v13 }
 0x312   : > { %v1387_v12 = vmul.f32 %v1371_v63, %v2340_v22  ;;  %v995_v19 = vadd.f32 %v994_v3, %v929_v26  ;;  %v1311_v34 = vmul.f32 %v1801_v29, %v1084_v55  ;;  %1806 = vrcp.f32 %v2698_v5 }
 0x313   : > { %v1138_v41 = vsel %vm1137_vm10, %v1793_v33, %v1134_v14  ;;  %vm1316_vm13 = vweird.f32 %v1801_v29  ;;  %1808 = vtanh.f32 %v2516_v43  ;;  %v1156_v38 = vand.u32 2147483648, %v2687_v13 }
 0x314   : > { %v1403_v40 = vadd.f32 %v1387_v12, %v1355_v9  ;;  %v1143_v56 = vsel %vm1140_vm11, %v1142_v37, %v1138_v41  ;;  %v1803_v47 = vpop.eup %1802  ;;  %v1312_v39 = vsub.f32 1.0, %v1311_v34  ;;  %v1566_v16 = vmul.f32 -1.442695, %v995_v19  ;;  %vm2711_vm15 = vmor %vm1315_vm12, %vm1316_vm13 }
 0x315   : > { %v1360_v22 = vsub.f32 1.0, %v1143_v56  ;;  %v1805_v35 = vpop.eup %1804  ;;  %v1146_v26 = vmul.f32 %v1803_v47, %v2687_v13  ;;  %v1344_v42 = vmul.f32 %v1797_v18, %v1143_v56  ;;  %vm1151_vm0 = vweird.f32 %v1803_v47 }
 0x316   : > { %1419 = vst [vmem:[%s2084_s19 + $0x70] sm:$0xff] %v1403_v40  ;;  %v1313_v4 = vmul.f32 %v1801_v29, %v1312_v39  ;;  %v2709_v28 = vadd.f32 1.0, %v1805_v35  ;;  %1810 = vpow2.f32 %v1566_v16  ;;  %vm1150_vm1 = vweird.f32 %v2687_v13 }
 0x317   : > { %v1376_v44 = vmul.f32 %v1360_v22, %v2345_v23  ;;  %v1147_v43 = vsub.f32 1.0, %v1146_v26  ;;  %vm1155_vm2 = vcmp.eq.f32.partialorder %v1154_v52, 8.507059e+37  ;;  %vm1152_vm3 = vmor %vm1150_vm1, %vm1151_vm0  ;;  %v1157_v51 = vor.u32 1.1754944e-38, %v1156_v38 }
 0x318   : > { %v1314_v20 = vadd.f32 %v1801_v29, %v1313_v4  ;;  %1812 = vrcp.f32 %v2709_v28  ;;  %v1807_v23 = vpop.eup %1806  ;;  %v1171_v18 = vand.u32 2147483648, %v2698_v5  ;;  %vm1165_vm5 = vweird.f32 %v2698_v5  ;;  %v1848_v4 = vld [vmem:[%s2072_s15 + $0x28] sm:$0xff] }
 0x319   : > { %v997_v32 = vpop.f32.mrf.mxu2  ;;  %v1392_v33 = vadd.f32 %v1376_v44, %v1344_v42  ;;  %1814 = vtanh.f32 %v2518_v45  ;;  %v1148_v55 = vmul.f32 %v1803_v47, %v1147_v43  ;;  %v1161_v60 = vmul.f32 %v1807_v23, %v2698_v5  ;;  %v1809_v62 = vpop.eup %1808 }
 0x31a   : > { %v998_v58 = vadd.f32 %v997_v32, %v932_v7  ;;  %1816 = vtanh.f32 %v2523_v49  ;;  %v1318_v59 = vsel %vm2711_vm15, %v1801_v29, %v1314_v20  ;;  %v1169_v45 = vand.u32 2147483647, %v2698_v5 }
 0x31b   : > { %1408 = vst [vmem:[%s2084_s19 + $0x18] sm:$0xff] %v1392_v33  ;;  %v1323_v0 = vsel %vm2703_vm14, %v1322_v31, %v1318_v59  ;;  %v1149_v36 = vadd.f32 %v1803_v47, %v1148_v55  ;;  %v1162_v49 = vsub.f32 1.0, %v1161_v60  ;;  %vm1166_vm4 = vweird.f32 %v1807_v23 }
 0x31c   : > { %v1372_v2 = vsub.f32 1.0, %v1323_v0  ;;  %v1811_v50 = vpop.eup %1810  ;;  %v1356_v8 = vmul.f32 %v1809_v62, %v1323_v0  ;;  %v1567_v13 = vmul.f32 -1.442695, %v998_v58  ;;  %vm2733_vm6 = vcmp.eq.f32.partialorder %v1169_v45, 8.507059e+37  ;;  %vm1167_vm7 = vmor %vm1165_vm5, %vm1166_vm4  ;;  %v1849_v0 = vld [vmem:[%s2072_s15 + $0x30] sm:$0xff] }
 0x31d   : > { %v1153_v21 = vsel %vm1152_vm3, %v1803_v47, %v1149_v36  ;;  %v1163_v30 = vmul.f32 %v1807_v23, %v1162_v49  ;;  %v2730_v3 = vadd.f32 1.0, %v1811_v50  ;;  %v1184_v34 = vand.u32 2147483647, %v2709_v28 }
 0x31e   : > { %v1813_v48 = vpop.eup %1812  ;;  %v1388_v63 = vmul.f32 %v1372_v2, %v2348_v24  ;;  %v1158_v10 = vsel %vm1155_vm2, %v1157_v51, %v1153_v21  ;;  %v1172_v24 = vor.u32 1.1754944e-38, %v1171_v18  ;;  %v1186_v15 = vand.u32 2147483648, %v2709_v28 }
 0x31f   : > { %v1815_v7 = vpop.eup %1814  ;;  %v1361_v9 = vsub.f32 1.0, %v1158_v10  ;;  %v1176_v14 = vmul.f32 %v1813_v48, %v2709_v28  ;;  %v1164_v19 = vadd.f32 %v1807_v23, %v1163_v30  ;;  %1818 = vrcp.f32 %v2730_v3 }
 0x320   : > { %v1817_v37 = vpop.eup %1816  ;;  %v1404_v27 = vadd.f32 %v1388_v63, %v1356_v8  ;;  %v1345_v40 = vmul.f32 %v1815_v7, %v1158_v10  ;;  %1820 = vpow2.f32 %v1567_v13  ;;  %vm1181_vm8 = vweird.f32 %v1813_v48 }
 0x321   : > { %v1000_v29 = vpop.f32.mrf.mxu2  ;;  %v1377_v41 = vmul.f32 %v1361_v9, %v2353_v25  ;;  %v1177_v5 = vsub.f32 1.0, %v1176_v14  ;;  %v1168_v56 = vsel %vm1167_vm7, %v1807_v23, %v1164_v19  ;;  %v938_v25 = vpop.f32.mrf.mxu1  ;;  %1822 = vtanh.f32 %v2526_v53  ;;  %v1850_v14 = vld [vmem:[%s2072_s15 + $0x38] sm:$0xff] }
 0x322   : > { %1420 = vst [vmem:[%s2084_s19 + $0x78] sm:$0xff] %v1404_v27  ;;  %v1001_v47 = vadd.f32 %v1000_v29, %v935_v46  ;;  %v1173_v39 = vsel %vm2733_vm6, %v1172_v24, %v1168_v56  ;;  %vm1180_vm9 = vweird.f32 %v2709_v28  ;;  %v1187_v31 = vor.u32 1.1754944e-38, %v1186_v15 }
 0x323   : > { %v1393_v22 = vadd.f32 %v1377_v41, %v1345_v40  ;;  %v1178_v35 = vmul.f32 %v1813_v48, %v1177_v5  ;;  %v1362_v17 = vsub.f32 1.0, %v1173_v39  ;;  %v1346_v44 = vmul.f32 %v1817_v37, %v1173_v39  ;;  %vm1182_vm10 = vmor %vm1180_vm9, %vm1181_vm8 }
 0x324   : > { %v1568_v26 = vmul.f32 -1.442695, %v1001_v47  ;;  %vm1185_vm11 = vcmp.eq.f32.partialorder %v1184_v34, 8.507059e+37  ;;  %v1199_v46 = vand.u32 2147483647, %v2730_v3  ;;  %v1201_v59 = vand.u32 2147483648, %v2730_v3 }
 0x325   : > { %1409 = vst [vmem:[%s2084_s19 + $0x20] sm:$0xff] %v1393_v22  ;;  %v1179_v16 = vadd.f32 %v1813_v48, %v1178_v35  ;;  %v1819_v42 = vpop.eup %1818  ;;  %v1378_v54 = vmul.f32 %v1848_v4, %v1362_v17  ;;  %vm1195_vm13 = vweird.f32 %v2730_v3 }
 0x326   : > { %1824 = vpow2.f32 %v1568_v26  ;;  %v1191_v52 = vmul.f32 %v1819_v42, %v2730_v3  ;;  %v1821_v53 = vpop.eup %1820  ;;  %vm1196_vm12 = vweird.f32 %v1819_v42  ;;  %v1202_v50 = vor.u32 1.1754944e-38, %v1201_v59  ;;  %v1852_v59 = vld [vmem:[%s2072_s15 + $0x48] sm:$0xff] }
 0x327   : > { %v1183_v43 = vsel %vm1182_vm10, %v1813_v48, %v1179_v16  ;;  %v1394_v33 = vadd.f32 %v1378_v54, %v1346_v44  ;;  %1826 = vtanh.f32 %v2529_v57  ;;  %v1077_v55 = vadd.f32 1.0, %v1821_v53  ;;  %v1823_v58 = vpop.eup %1822  ;;  %vm1197_vm14 = vmor %vm1195_vm13, %vm1196_vm12 }
 0x328   : > { %v1188_v20 = vsel %vm1185_vm11, %v1187_v31, %v1183_v43  ;;  %v1192_v23 = vsub.f32 1.0, %v1191_v52  ;;  %vm1200_vm15 = vcmp.eq.f32.partialorder %v1199_v46, 8.507059e+37  ;;  %v1851_v52 = vld [vmem:[%s2072_s15 + $0x40] sm:$0xff] }
 0x329   : > { %v1003_v32 = vpop.f32.mrf.mxu2  ;;  %v1363_v28 = vsub.f32 1.0, %v1188_v20  ;;  %1410 = vst [vmem:[%s2084_s19 + $0x28] sm:$0xff] %v1394_v33  ;;  %v1347_v62 = vmul.f32 %v1823_v58, %v1188_v20  ;;  %1828 = vrcp.f32 %v1077_v55  ;;  %v941_v18 = vpop.f32.mrf.mxu1  ;;  %v1216_v40 = vand.u32 2147483648, %v1077_v55 }
 0x32a   : > { %v1004_v38 = vadd.f32 %v1003_v32, %v938_v25  ;;  %v1193_v45 = vmul.f32 %v1819_v42, %v1192_v23  ;;  %v1214_v5 = vand.u32 2147483647, %v1077_v55  ;;  %vm1210_vm1 = vweird.f32 %v1077_v55 }
 0x32b   : > { %v1379_v36 = vmul.f32 %v1849_v0, %v1363_v28  ;;  %v1217_v47 = vor.u32 1.1754944e-38, %v1216_v40 }
 0x32c   : > { %v1569_v60 = vmul.f32 -1.442695, %v1004_v38  ;;  %v1825_v2 = vpop.eup %1824  ;;  %v1194_v51 = vadd.f32 %v1819_v42, %v1193_v45  ;;  %vm1215_vm3 = vcmp.eq.f32.partialorder %v1214_v5, 8.507059e+37 }
 0x32d   : > { %v1395_v57 = vadd.f32 %v1379_v36, %v1347_v62  ;;  %v1078_v49 = vadd.f32 1.0, %v1825_v2  ;;  %v1827_v8 = vpop.eup %1826 }
 0x32e   : > { %1830 = vpow2.f32 %v1569_v60  ;;  %v1198_v21 = vsel %vm1197_vm14, %v1819_v42, %v1194_v51 }
 0x32f   : > { %1411 = vst [vmem:[%s2084_s19 + $0x30] sm:$0xff] %v1395_v57  ;;  %1832 = vrcp.f32 %v1078_v49  ;;  %v1203_v48 = vsel %vm1200_vm15, %v1202_v50, %v1198_v21  ;;  %v1829_v10 = vpop.eup %1828  ;;  %v1229_v22 = vand.u32 2147483647, %v1078_v49  ;;  %v1231_v39 = vand.u32 2147483648, %v1078_v49 }
 0x330   : > { %v1364_v30 = vsub.f32 1.0, %v1203_v48  ;;  %v1206_v9 = vmul.f32 %v1829_v10, %v1077_v55  ;;  %v1348_v3 = vmul.f32 %v1827_v8, %v1203_v48  ;;  %vm1211_vm0 = vweird.f32 %v1829_v10 }
 0x331   : > { %v1006_v13 = vpop.f32.mrf.mxu2  ;;  %vm1212_vm2 = vmor %vm1210_vm1, %vm1211_vm0  ;;  %vm1225_vm5 = vweird.f32 %v1078_v49  ;;  %vm1230_vm7 = vcmp.eq.f32.partialorder %v1229_v22, 8.507059e+37  ;;  %v1232_v31 = vor.u32 1.1754944e-38, %v1231_v39 }
 0x332   : > { %v1007_v63 = vadd.f32 %v1006_v13, %v941_v18  ;;  %v1380_v29 = vmul.f32 %v1850_v14, %v1364_v30  ;;  %v1207_v27 = vsub.f32 1.0, %v1206_v9  ;;  %v1853_v13 = vld [vmem:[%s2072_s15 + $0x50] sm:$0xff] }
 0x334   : > { %v1831_v7 = vpop.eup %1830  ;;  %v1570_v12 = vmul.f32 -1.442695, %v1007_v63  ;;  %v1396_v24 = vadd.f32 %v1380_v29, %v1348_v3  ;;  %v1208_v41 = vmul.f32 %v1829_v10, %v1207_v27 }
 0x335   : > { %v2760_v37 = vadd.f32 1.0, %v1831_v7  ;;  %v1833_v19 = vpop.eup %1832 }
 0x336   : > { %1834 = vpow2.f32 %v1570_v12  ;;  %v1221_v34 = vmul.f32 %v1833_v19, %v1078_v49  ;;  %1412 = vst [vmem:[%s2084_s19 + $0x38] sm:$0xff] %v1396_v24  ;;  %v1209_v56 = vadd.f32 %v1829_v10, %v1208_v41  ;;  %vm1226_vm4 = vweird.f32 %v1833_v19 }
 0x337   : > { %1836 = vrcp.f32 %v2760_v37  ;;  %vm1227_vm6 = vmor %vm1225_vm5, %vm1226_vm4  ;;  %v1244_v20 = vand.u32 2147483647, %v2760_v37  ;;  %v1246_v38 = vand.u32 2147483648, %v2760_v37  ;;  %vm1240_vm9 = vweird.f32 %v2760_v37 }
 0x338   : > { %1838 = vtanh.f32 %v2532_v61  ;;  %v1222_v15 = vsub.f32 1.0, %v1221_v34  ;;  %v1213_v25 = vsel %vm1212_vm2, %v1829_v10, %v1209_v56 }
 0x339   : > { %1840 = vtanh.f32 %v2535_v1  ;;  %v1218_v16 = vsel %vm1215_vm3, %v1217_v47, %v1213_v25  ;;  %v1247_v36 = vor.u32 1.1754944e-38, %v1246_v38  ;;  %vm1245_vm11 = vcmp.eq.f32.partialorder %v1244_v20, 8.507059e+37 }
 0x33a   : > { %v1223_v17 = vmul.f32 %v1833_v19, %v1222_v15  ;;  %v1365_v61 = vsub.f32 1.0, %v1218_v16 }
 0x33c   : > { %v1835_v35 = vpop.eup %1834  ;;  %v1224_v44 = vadd.f32 %v1833_v19, %v1223_v17  ;;  %v1381_v32 = vmul.f32 %v1851_v52, %v1365_v61 }
 0x33d   : > { %v1837_v26 = vpop.eup %1836  ;;  %v1080_v42 = vadd.f32 1.0, %v1835_v35 }
 0x33e   : > { %v1236_v4 = vmul.f32 %v1837_v26, %v2760_v37  ;;  %v1839_v54 = vpop.eup %1838  ;;  %v1228_v53 = vsel %vm1227_vm6, %v1833_v19, %v1224_v44  ;;  %vm1241_vm8 = vweird.f32 %v1837_v26  ;;  %v1854_v37 = vld [vmem:[%s2072_s15 + $0x58] sm:$0xff] }
 0x33f   : > { %1842 = vrcp.f32 %v1080_v42  ;;  %v1349_v43 = vmul.f32 %v1839_v54, %v1218_v16  ;;  %v1233_v1 = vsel %vm1230_vm7, %v1232_v31, %v1228_v53  ;;  %v1841_v58 = vpop.eup %1840  ;;  %vm1242_vm10 = vmor %vm1240_vm9, %vm1241_vm8  ;;  %v1259_v50 = vand.u32 2147483647, %v1080_v42 }
 0x340   : > { %v1237_v33 = vsub.f32 1.0, %v1236_v4  ;;  %v1366_v23 = vsub.f32 1.0, %v1233_v1  ;;  %1844 = vtanh.f32 %v2538_v6  ;;  %v1350_v46 = vmul.f32 %v1841_v58, %v1233_v1 }
 0x341   : > { %v1397_v28 = vadd.f32 %v1381_v32, %v1349_v43  ;;  %v1261_v8 = vand.u32 2147483648, %v1080_v42  ;;  %1846 = vtanh.f32 %v2541_v11  ;;  %vm1255_vm13 = vweird.f32 %v1080_v42 }
 0x342   : > { %v1238_v55 = vmul.f32 %v1837_v26, %v1237_v33  ;;  %v1382_v60 = vmul.f32 %v1852_v59, %v1366_v23  ;;  %vm1260_vm15 = vcmp.eq.f32.partialorder %v1259_v50, 8.507059e+37 }
 0x343   : > { %1413 = vst [vmem:[%s2084_s19 + $0x40] sm:$0xff] %v1397_v28  ;;  %v1262_v7 = vor.u32 1.1754944e-38, %v1261_v8 }
 0x344   : > { %v1239_v62 = vadd.f32 %v1837_v26, %v1238_v55  ;;  %v1398_v45 = vadd.f32 %v1382_v60, %v1350_v46 }
 0x345   : > { %v1843_v0 = vpop.eup %1842 }
 0x346   : > { %v1243_v2 = vsel %vm1242_vm10, %v1837_v26, %v1239_v62  ;;  %v1251_v57 = vmul.f32 %v1843_v0, %v1080_v42  ;;  %1414 = vst [vmem:[%s2084_s19 + $0x48] sm:$0xff] %v1398_v45  ;;  %v1845_v18 = vpop.eup %1844  ;;  %vm1256_vm12 = vweird.f32 %v1843_v0 }
 0x347   : > { %v1248_v51 = vsel %vm1245_vm11, %v1247_v36, %v1243_v2  ;;  %vm1257_vm14 = vmor %vm1255_vm13, %vm1256_vm12  ;;  %v1847_v14 = vpop.eup %1846 }
 0x348   : > { %v1367_v49 = vsub.f32 1.0, %v1248_v51  ;;  %v1252_v6 = vsub.f32 1.0, %v1251_v57  ;;  %v1351_v21 = vmul.f32 %v1845_v18, %v1248_v51 }
 0x34a   : > { %v1383_v48 = vmul.f32 %v1853_v13, %v1367_v49  ;;  %v1253_v63 = vmul.f32 %v1843_v0, %v1252_v6 }
 0x34c   : > { %v1399_v10 = vadd.f32 %v1383_v48, %v1351_v21  ;;  %v1254_v30 = vadd.f32 %v1843_v0, %v1253_v63 }
 0x34e   : > { %1415 = vst [vmem:[%s2084_s19 + $0x50] sm:$0xff] %v1399_v10  ;;  %v1258_v9 = vsel %vm1257_vm14, %v1843_v0, %v1254_v30 }
 0x34f   : > { %v1263_v12 = vsel %vm1260_vm15, %v1262_v7, %v1258_v9 }
 0x350   : > { %v1368_v3 = vsub.f32 1.0, %v1263_v12  ;;  %v1352_v29 = vmul.f32 %v1847_v14, %v1263_v12 }
 0x352   : > { %v1384_v27 = vmul.f32 %v1854_v37, %v1368_v3 }
 0x354   : > { %v1400_v19 = vadd.f32 %v1384_v27, %v1352_v29 }
 0x356   : > { %1416 = vst [vmem:[%s2084_s19 + $0x58] sm:$0xff] %v1400_v19 }
 0x357 PF: > { %s1581_s11 = sshll.u32 %s1937_s28, 7  ;;  %s1434_s18 = sshll.u32 %s2084_s19, 4  ;;  %s1435_s18 = int_to_ptr.vmem [resolvable:$true] %s1434_s18 }
 0x358   : > { %s1433_s17 = scalar_lea.hbm %s2832_s7, %s1581_s11  ;;  %s2874_s24 = sand.u32 1, %s1925_s25  }
 0x359   : > { %s1436_s20 = sshll.u32 %s1433_s17, 4  ;;  %s1422_s26 = scalar_lea.sflag [#allocation4], %s2874_s24  ;;  %s1437_s20 = int_to_ptr.hbm [resolvable:$true] %s1436_s20 }
 0x35a   : > { %s1869_s15 = sshra.s32 %s1437_s20, 4  ;;  %s1875_s28 = scalar_lea.hbm %s2832_s7, 256  ;;  %s1870_s15 = int_to_ptr.hbm [resolvable:$true] %s1869_s15 }
 0x35b   : > { %s1871_s21 = scalar_lea.hbm %s1870_s15, 128  ;;  %p1876_p6 = scmp.lt.s32.totalorder %s1870_s15, %s2832_s7 }
 0x35c   : > { %p1872_p2 = scmp.ne.s32.totalorder %s1870_s15, %s1871_s21  ;;  %p1877_p7 = scmp.lt.s32.totalorder %s1875_s28, %s1871_s21 }
 0x35e   : > { %p1873_p4 = pnand %p1872_p2, %p2043_p3  ;;  %p1878_p8 = por %p1877_p7, %p1876_p6 }
 0x360   : > { %p1874_p5 = pneg %p1873_p4 }
 0x362   : > { %p1879_p10 = pnand %p1878_p8, %p1874_p5 }
 0x364   : > { %1882 = shalt.err (!%p1879_p10)
}
 0x365   : > { %s1952_s19 = smov 128   ;;  %s1953_s16 = smov 8  }
 0x366   : > { %1678 = dma.vmem_to_hbm [thread:$0]  (%p2043_p3), %s1435_s18, 2048, %s1437_s20, %s1422_s26, %s1952_s19, %s1952_s19, %s1953_s16  }
 0x367 PF: > { %s2875_s27 = sld [smem:[#allocation6_spill]]  ;;  %p1684_p11 = scmp.ge.s32.totalorder %s1949_s8, 2 }
 0x369   : > { %p1681_p12 = pnand %p1684_p11, %p2053_p9 }
 0x36b   : > { %p1682_p13 = pneg %p1681_p12 }
 0x36d   : > { %s1451_s30 = sand.u32 1, %s2875_s27  }
 0x36e   : > { %s1452_s11 = scalar_lea.sflag [#allocation4], %s1451_s30 }
 0x36f   : > { %1916 = dma.done.wait (%p1682_p13), %s1452_s11, 2048  }
 0x370   : > { %1918 = vsyncadd (%p1682_p13), %s1452_s11, 4294965248  ;;  %s20_s8 = sadd.s32 1, %s1949_s8   ;;  %s2877_s12 = sld [smem:[#allocation7_spill]] }
 0x371   : > { %p17_p0 = scmp.ge.s32.totalorder %s20_s8, 8   ;;  %s2878_s26 = sld [smem:[#allocation13_spill]] }
 0x372   : > { %s2879_s27 = sld [smem:[#allocation8_spill]]  ;;  %s2883_s24 = smov %s1925_s25 }
 0x373   : > { %s2880_s28 = sld [smem:[#allocation9_spill]]  ;;  %19 = sbr.rel (!%p17_p0) target bundleno = 5 (0x5), region = 97 }
 0x374   : > { %s2881_s29 = sld [smem:[#allocation10_spill]] }
 0x375   : > { %s2882_s30 = sld [smem:[#allocation11_spill]] }
 0x376   : > { %s2884_s25 = smov %s2877_s12 }
 0x378   :  { %1458 = vsyncpa [#allocation4], 1 }
 0x379   :  { %1460 = vsyncpa [#allocation4 + $0x1], 1 }

</bundles_post_ra>
